<compile_context>
chip_gen: v7x
topology: tpu7x:2x2x1
jax: 0.10.0
libtpu: 0.0.40
codegen_flags: <defaults>
</compile_context>

<pallas_src>
import functools

import jax
import jax.numpy as jnp
from jax.experimental import pallas as pl
from jax.experimental.pallas import tpu as pltpu

NEG_SLOPE = 0.2
H1, H2, H3, OUT = 1024, 512, 256, 1
LANE = 128
OUT_PAD = 128  # lane-dense output slab; the real logit lives in column 0


def _leaky_relu(x):
    # max(x, a*x) == LeakyReLU(a) for 0 < a < 1; cheaper than where(compare, ...).
    return jnp.maximum(x, NEG_SLOPE * x)


def _disc_kernel(x_ref,
                 w1_ref, b1_ref,
                 w2_ref, b2_ref,
                 w3_ref, b3_ref,
                 w4_ref, b4_ref,
                 o_ref):
    # Fused 4-layer MLP over one batch tile. Weights are bf16 and VMEM-resident
    # (constant index maps -> DMA'd once); each layer is a bf16 MXU matmul with
    # f32 accumulation, then bias + LeakyReLU on the f32 accumulator.
    x = x_ref[...].astype(jnp.bfloat16)

    h = jnp.dot(x, w1_ref[...], preferred_element_type=jnp.float32) + b1_ref[...]
    h = _leaky_relu(h)
    # Dropout(0.3): identity in eval mode.
    # TODO(synk): training-mode dropout (Bernoulli mask via pltpu.prng_random_bits)
    # is not implemented; this matches model.eval().
    h = jnp.dot(h.astype(jnp.bfloat16), w2_ref[...],
                preferred_element_type=jnp.float32) + b2_ref[...]
    h = _leaky_relu(h)
    h = jnp.dot(h.astype(jnp.bfloat16), w3_ref[...],
                preferred_element_type=jnp.float32) + b3_ref[...]
    h = _leaky_relu(h)
    y = jnp.dot(h.astype(jnp.bfloat16), w4_ref[...],
                preferred_element_type=jnp.float32) + b4_ref[...]
    o_ref[...] = y.astype(o_ref.dtype)   # (bm, 128) lane-dense store


def _round_up(x, m):
    return ((x + m - 1) // m) * m


def _vmem_capped_block_m(block_m, f_padded):
    """Cap the batch tile so the per-TensorCore VMEM footprint stays well under
    v7x's 64 MiB (v5e/v6e have 128 MiB, so the same cap is conservative there)."""
    budget = 36 << 20
    # Resident weights + biases (double-buffered by the default pipeline).
    weight_bytes = 2 * (2 * (f_padded * H1 + H1 * H2 + H2 * H3 + H3 * OUT_PAD)
                        + 4 * (H1 + H2 + H3 + OUT_PAD))
    # Per batch-row: double-buffered f32 x tile + double-buffered f32 output slab
    # + f32/bf16 layer intermediates (~6 bytes per hidden element).
    per_row = 2 * 4 * f_padded + 2 * 4 * OUT_PAD + 6 * (H1 + H2 + H3)
    bm_max = (budget - weight_bytes) // per_row
    return max(8, min(block_m, (bm_max // 8) * 8))


def _choose_block_m(batch, block_m):
    """Balanced batch tiling.

    - Whole batch in one tile if it fits block_m (a v7x 2-TC split only pays off
      once each core gets ~512+ rows, i.e. batch > block_m anyway; below that the
      duplicated ~1.5 MiB weight fetch outweighs the parallelism).
    - Otherwise split into the minimum number of equal-size tiles, e.g.
      B=260 -> 2 x 136 instead of 2 x 256 (avoids ~2x padded-row waste).
    """
    b8 = _round_up(batch, 8)
    if b8 <= block_m:
        return b8
    n_tiles = pl.cdiv(b8, block_m)
    return _round_up(pl.cdiv(b8, n_tiles), 8)


def prepare_params(params):
    """One-time conversion to the kernel layout (call once, NOT per forward):
      * weights -> bf16 (MXU-native; halves resident/HBM weight bytes)
      * W1 K-dim zero-padded to a multiple of 128 (full MXU contraction depth)
      * W4 / b4 N-dim zero-padded to 128 so the output block is lane-dense
      * biases -> (1, N) f32, added on the f32 accumulator
    """
    w1, b1, w2, b2, w3, b3, w4, b4 = params
    f = w1.shape[0]
    fp = max(LANE, _round_up(f, LANE))

    w1p = jnp.pad(w1, ((0, fp - f), (0, 0))).astype(jnp.bfloat16)
    w2p = w2.astype(jnp.bfloat16)
    w3p = w3.astype(jnp.bfloat16)
    w4p = jnp.pad(w4, ((0, 0), (0, OUT_PAD - OUT))).astype(jnp.bfloat16)
    b1p = b1.reshape(1, H1).astype(jnp.float32)
    b2p = b2.reshape(1, H2).astype(jnp.float32)
    b3p = b3.reshape(1, H3).astype(jnp.float32)
    b4p = jnp.pad(b4, (0, OUT_PAD - OUT)).reshape(1, OUT_PAD).astype(jnp.float32)
    return (w1p, b1p, w2p, b2p, w3p, b3p, w4p, b4p)


@functools.partial(jax.jit, static_argnames=("block_m",))
def discriminator_forward(x, prepared_params, block_m=512):
    """x: (B, input_size) f32.  prepared_params: output of prepare_params().
    Returns (B, 1) f32 (eval-mode forward)."""
    w1, b1, w2, b2, w3, b3, w4, b4 = prepared_params
    B, F = x.shape
    Fp = w1.shape[0]
    assert F <= Fp, (F, Fp)

    bm = _choose_block_m(B, _vmem_capped_block_m(block_m, Fp))
    pad_b = (-B) % bm
    pad_f = Fp - F
    if pad_b or pad_f:
        # Single pad covering both the batch tail and the feature lanes; padded
        # rows/cols are zeros and matching W1 rows are zero, so math is exact.
        x = jnp.pad(x, ((0, pad_b), (0, pad_f)))
    Bp = B + pad_b

    # Constant index_maps: weights/biases DMA'd once, VMEM-resident across the grid.
    # NOTE: pipeline_mode=pl.Buffered(1) on these would drop the duplicate ~1.5 MiB
    # buffer; skipped here since the footprint is far below the VMEM budget.
    const = lambda *shape: pl.BlockSpec(shape, lambda i: tuple(0 for _ in shape))

    out = pl.pallas_call(
        _disc_kernel,
        out_shape=jax.ShapeDtypeStruct((Bp, OUT_PAD), jnp.float32),
        grid_spec=pltpu.PrefetchScalarGridSpec(
            num_scalar_prefetch=0,
            grid=(Bp // bm,),
            in_specs=[
                pl.BlockSpec((bm, Fp), lambda i: (i, 0)),   # x tile
                const(Fp, H1), const(1, H1),
                const(H1, H2), const(1, H2),
                const(H2, H3), const(1, H3),
                const(H3, OUT_PAD), const(1, OUT_PAD),
            ],
            out_specs=pl.BlockSpec((bm, OUT_PAD), lambda i: (i, 0)),
        ),
        compiler_params=pltpu.CompilerParams(
            dimension_semantics=("parallel",),
            # Footprint is capped to ~36 MiB by _vmem_capped_block_m; 48 MiB
            # leaves compiler-scratch headroom under v7x's 64 MiB per core.
            vmem_limit_bytes=48 << 20,
        ),
    )(x, w1, b1, w2, b2, w3, b3, w4, b4)

    return out[:B, :OUT]


def init_params(key, input_size):
    """Deterministic init mirroring nn.Linear shapes (weights transposed)."""
    ks = jax.random.split(key, 8)

    def linear(kw, kb, fan_in, fan_out):
        bound = 1.0 / jnp.sqrt(fan_in)
        w = jax.random.uniform(kw, (fan_in, fan_out), jnp.float32, -bound, bound)
        b = jax.random.uniform(kb, (fan_out,), jnp.float32, -bound, bound)
        return w, b

    w1, b1 = linear(ks[0], ks[1], input_size, H1)
    w2, b2 = linear(ks[2], ks[3], H1, H2)
    w3, b3 = linear(ks[4], ks[5], H2, H3)
    w4, b4 = linear(ks[6], ks[7], H3, OUT)
    return (w1, b1, w2, b2, w3, b3, w4, b4)


def _reference_forward(x, params):
    """Plain-JAX reference using the same bf16-weight / f32-accumulate math.
    (The bf16 weight cast introduces ~1e-2 relative error vs a pure-f32 torch run.)"""
    w1, b1, w2, b2, w3, b3, w4, b4 = params

    def lin(h, w, b):
        return jnp.dot(h.astype(jnp.bfloat16), w.astype(jnp.bfloat16),
                       preferred_element_type=jnp.float32) + b.reshape(1, -1)

    h = jax.nn.leaky_relu(lin(x, w1, b1), NEG_SLOPE)
    h = jax.nn.leaky_relu(lin(h, w2, b2), NEG_SLOPE)
    h = jax.nn.leaky_relu(lin(h, w3, b3), NEG_SLOPE)
    return lin(h, w4, b4)


if __name__ == "__main__":
    key = jax.random.PRNGKey(0)
    k_x, k_p = jax.random.split(key)

    batch, input_size = 16, 64
    x = jax.random.normal(k_x, (batch, input_size), jnp.float32)
    params = init_params(k_p, input_size)
    prepared = prepare_params(params)   # one-time layout/dtype prep, outside jit

    out = discriminator_forward(x, prepared)
    out = jax.block_until_ready(out)

    ref = _reference_forward(x, params)
    assert out.shape == (batch, 1), out.shape
    max_err = float(jnp.max(jnp.abs(out - ref)))
    assert jnp.allclose(out, ref, atol=2e-2, rtol=2e-2), max_err

    print("KERNEL_OK")
</pallas_src>

<mosaic_0001>
module attributes {stable_mosaic.version = 11 : i64} {
  func.func @_disc_kernel(%arg0: i32, %arg1: memref<16x128xf32, #tpu.memory_space<vmem>>, %arg2: memref<128x1024xbf16, #tpu.memory_space<vmem>>, %arg3: memref<1x1024xf32, #tpu.memory_space<vmem>>, %arg4: memref<1024x512xbf16, #tpu.memory_space<vmem>>, %arg5: memref<1x512xf32, #tpu.memory_space<vmem>>, %arg6: memref<512x256xbf16, #tpu.memory_space<vmem>>, %arg7: memref<1x256xf32, #tpu.memory_space<vmem>>, %arg8: memref<256x128xbf16, #tpu.memory_space<vmem>>, %arg9: memref<1x128xf32, #tpu.memory_space<vmem>>, %arg10: memref<16x128xf32, #tpu.memory_space<vmem>>) attributes {dimension_semantics = [#tpu.dimension_semantics<parallel>], iteration_bounds = array<i64: 1>, scalar_prefetch = 0 : i64, scratch_operands = 0 : i64, tpu.core_type = #tpu.core_type<tc>, window_params = [{transform_indices = @transform_0, window_bounds = array<i64: 16, 128>}, {pipeline_mode = #tpu.pipeline_mode<synchronous>, transform_indices = @transform_1, window_bounds = array<i64: 128, 1024>}, {pipeline_mode = #tpu.pipeline_mode<synchronous>, transform_indices = @transform_2, window_bounds = array<i64: 1, 1024>}, {pipeline_mode = #tpu.pipeline_mode<synchronous>, transform_indices = @transform_3, window_bounds = array<i64: 1024, 512>}, {pipeline_mode = #tpu.pipeline_mode<synchronous>, transform_indices = @transform_4, window_bounds = array<i64: 1, 512>}, {pipeline_mode = #tpu.pipeline_mode<synchronous>, transform_indices = @transform_5, window_bounds = array<i64: 512, 256>}, {pipeline_mode = #tpu.pipeline_mode<synchronous>, transform_indices = @transform_6, window_bounds = array<i64: 1, 256>}, {pipeline_mode = #tpu.pipeline_mode<synchronous>, transform_indices = @transform_7, window_bounds = array<i64: 256, 128>}, {pipeline_mode = #tpu.pipeline_mode<synchronous>, transform_indices = @transform_8, window_bounds = array<i64: 1, 128>}, {transform_indices = @transform_9, window_bounds = array<i64: 16, 128>}]} {
    %c0 = arith.constant 0 : index
    %c0_0 = arith.constant 0 : index
    %0 = vector.load %arg1[%c0, %c0_0] : memref<16x128xf32, #tpu.memory_space<vmem>>, vector<16x128xf32>
    %1 = arith.truncf %0 : vector<16x128xf32> to vector<16x128xbf16>
    %c0_1 = arith.constant 0 : index
    %c0_2 = arith.constant 0 : index
    %2 = vector.load %arg2[%c0_1, %c0_2] : memref<128x1024xbf16, #tpu.memory_space<vmem>>, vector<128x1024xbf16>
    %cst = arith.constant dense<0.000000e+00> : vector<16x1024xf32>
    %3 = tpu.matmul %1, %2, %cst {dimension_numbers = #tpu.dot_dimension_numbers<[1], [0], [0], [1], [0, 0, 1, 1], [], []>} : vector<16x128xbf16>, vector<128x1024xbf16>, vector<16x1024xf32> -> vector<16x1024xf32>
    %c0_3 = arith.constant 0 : index
    %c0_4 = arith.constant 0 : index
    %4 = vector.load %arg3[%c0_3, %c0_4] : memref<1x1024xf32, #tpu.memory_space<vmem>>, vector<1x1024xf32>
    %5 = vector.broadcast %4 : vector<1x1024xf32> to vector<16x1024xf32>
    %6 = arith.addf %3, %5 : vector<16x1024xf32>
    %cst_5 = arith.constant 2.000000e-01 : f32
    %7 = vector.broadcast %cst_5 : f32 to vector<16x1024xf32>
    %8 = arith.mulf %7, %6 : vector<16x1024xf32>
    %9 = arith.maximumf %6, %8 : vector<16x1024xf32>
    %10 = arith.truncf %9 : vector<16x1024xf32> to vector<16x1024xbf16>
    %c0_6 = arith.constant 0 : index
    %c0_7 = arith.constant 0 : index
    %11 = vector.load %arg4[%c0_6, %c0_7] : memref<1024x512xbf16, #tpu.memory_space<vmem>>, vector<1024x512xbf16>
    %cst_8 = arith.constant dense<0.000000e+00> : vector<16x512xf32>
    %12 = tpu.matmul %10, %11, %cst_8 {dimension_numbers = #tpu.dot_dimension_numbers<[1], [0], [0], [1], [0, 0, 1, 1], [], []>} : vector<16x1024xbf16>, vector<1024x512xbf16>, vector<16x512xf32> -> vector<16x512xf32>
    %c0_9 = arith.constant 0 : index
    %c0_10 = arith.constant 0 : index
    %13 = vector.load %arg5[%c0_9, %c0_10] : memref<1x512xf32, #tpu.memory_space<vmem>>, vector<1x512xf32>
    %14 = vector.broadcast %13 : vector<1x512xf32> to vector<16x512xf32>
    %15 = arith.addf %12, %14 : vector<16x512xf32>
    %cst_11 = arith.constant 2.000000e-01 : f32
    %16 = vector.broadcast %cst_11 : f32 to vector<16x512xf32>
    %17 = arith.mulf %16, %15 : vector<16x512xf32>
    %18 = arith.maximumf %15, %17 : vector<16x512xf32>
    %19 = arith.truncf %18 : vector<16x512xf32> to vector<16x512xbf16>
    %c0_12 = arith.constant 0 : index
    %c0_13 = arith.constant 0 : index
    %20 = vector.load %arg6[%c0_12, %c0_13] : memref<512x256xbf16, #tpu.memory_space<vmem>>, vector<512x256xbf16>
    %cst_14 = arith.constant dense<0.000000e+00> : vector<16x256xf32>
    %21 = tpu.matmul %19, %20, %cst_14 {dimension_numbers = #tpu.dot_dimension_numbers<[1], [0], [0], [1], [0, 0, 1, 1], [], []>} : vector<16x512xbf16>, vector<512x256xbf16>, vector<16x256xf32> -> vector<16x256xf32>
    %c0_15 = arith.constant 0 : index
    %c0_16 = arith.constant 0 : index
    %22 = vector.load %arg7[%c0_15, %c0_16] : memref<1x256xf32, #tpu.memory_space<vmem>>, vector<1x256xf32>
    %23 = vector.broadcast %22 : vector<1x256xf32> to vector<16x256xf32>
    %24 = arith.addf %21, %23 : vector<16x256xf32>
    %cst_17 = arith.constant 2.000000e-01 : f32
    %25 = vector.broadcast %cst_17 : f32 to vector<16x256xf32>
    %26 = arith.mulf %25, %24 : vector<16x256xf32>
    %27 = arith.maximumf %24, %26 : vector<16x256xf32>
    %28 = arith.truncf %27 : vector<16x256xf32> to vector<16x256xbf16>
    %c0_18 = arith.constant 0 : index
    %c0_19 = arith.constant 0 : index
    %29 = vector.load %arg8[%c0_18, %c0_19] : memref<256x128xbf16, #tpu.memory_space<vmem>>, vector<256x128xbf16>
    %cst_20 = arith.constant dense<0.000000e+00> : vector<16x128xf32>
    %30 = tpu.matmul %28, %29, %cst_20 {dimension_numbers = #tpu.dot_dimension_numbers<[1], [0], [0], [1], [0, 0, 1, 1], [], []>} : vector<16x256xbf16>, vector<256x128xbf16>, vector<16x128xf32> -> vector<16x128xf32>
    %c0_21 = arith.constant 0 : index
    %c0_22 = arith.constant 0 : index
    %31 = vector.load %arg9[%c0_21, %c0_22] : memref<1x128xf32, #tpu.memory_space<vmem>>, vector<1x128xf32>
    %32 = vector.broadcast %31 : vector<1x128xf32> to vector<16x128xf32>
    %33 = arith.addf %30, %32 : vector<16x128xf32>
    %c0_23 = arith.constant 0 : index
    %c0_24 = arith.constant 0 : index
    %34 = vector.load %arg10[%c0_23, %c0_24] : memref<16x128xf32, #tpu.memory_space<vmem>>, vector<16x128xf32>
    tpu.vector_store %arg10[%c0_23, %c0_24], %33 {strides = array<i32>} : memref<16x128xf32, #tpu.memory_space<vmem>>, vector<16x128xf32>,
    return
  }
  func.func @transform_0(%arg0: i32) -> (i32, i32) {
    %c0_i32 = arith.constant 0 : i32
    %c0_i32_0 = arith.constant 0 : i32
    return %arg0, %c0_i32 : i32, i32
  }
  func.func @transform_1(%arg0: i32) -> (i32, i32) {
    %c0_i32 = arith.constant 0 : i32
    %c0_i32_0 = arith.constant 0 : i32
    %c0_i32_1 = arith.constant 0 : i32
    return %c0_i32, %c0_i32_0 : i32, i32
  }
  func.func @transform_2(%arg0: i32) -> (i32, i32) {
    %c0_i32 = arith.constant 0 : i32
    %c0_i32_0 = arith.constant 0 : i32
    %c0_i32_1 = arith.constant 0 : i32
    return %c0_i32, %c0_i32_0 : i32, i32
  }
  func.func @transform_3(%arg0: i32) -> (i32, i32) {
    %c0_i32 = arith.constant 0 : i32
    %c0_i32_0 = arith.constant 0 : i32
    %c0_i32_1 = arith.constant 0 : i32
    return %c0_i32, %c0_i32_0 : i32, i32
  }
  func.func @transform_4(%arg0: i32) -> (i32, i32) {
    %c0_i32 = arith.constant 0 : i32
    %c0_i32_0 = arith.constant 0 : i32
    %c0_i32_1 = arith.constant 0 : i32
    return %c0_i32, %c0_i32_0 : i32, i32
  }
  func.func @transform_5(%arg0: i32) -> (i32, i32) {
    %c0_i32 = arith.constant 0 : i32
    %c0_i32_0 = arith.constant 0 : i32
    %c0_i32_1 = arith.constant 0 : i32
    return %c0_i32, %c0_i32_0 : i32, i32
  }
  func.func @transform_6(%arg0: i32) -> (i32, i32) {
    %c0_i32 = arith.constant 0 : i32
    %c0_i32_0 = arith.constant 0 : i32
    %c0_i32_1 = arith.constant 0 : i32
    return %c0_i32, %c0_i32_0 : i32, i32
  }
  func.func @transform_7(%arg0: i32) -> (i32, i32) {
    %c0_i32 = arith.constant 0 : i32
    %c0_i32_0 = arith.constant 0 : i32
    %c0_i32_1 = arith.constant 0 : i32
    return %c0_i32, %c0_i32_0 : i32, i32
  }
  func.func @transform_8(%arg0: i32) -> (i32, i32) {
    %c0_i32 = arith.constant 0 : i32
    %c0_i32_0 = arith.constant 0 : i32
    %c0_i32_1 = arith.constant 0 : i32
    return %c0_i32, %c0_i32_0 : i32, i32
  }
  func.func @transform_9(%arg0: i32) -> (i32, i32) {
    %c0_i32 = arith.constant 0 : i32
    %c0_i32_0 = arith.constant 0 : i32
    return %arg0, %c0_i32 : i32, i32
  }
}

</mosaic_0001>

<bundles_post_ra>
// kernel: discriminator_forward.1
= control target key start
LH: loop header
LB: loop body
LE: loop exit
PB: predicated region body
PF: predicated region fallthrough
CT: control target
= control target key end

     0   :  { %14 = vsyncpa [#allocation3], 0  ;;  %s4600_s0 = inlined_call_operand.vmem [shape: f32[16,128], index: 0, kind: input, shape index: {}]   ;;  %s4601_s1 = inlined_call_operand.hbm [shape: bf16[128,1024], index: 1, kind: input, shape index: {}]   ;;  %s4602_s2 = inlined_call_operand.vmem [shape: f32[1,1024], index: 2, kind: input, shape index: {}]   ;;  %s4603_s3 = inlined_call_operand.hbm [shape: bf16[1024,512], index: 3, kind: input, shape index: {}]   ;;  %s4604_s4 = inlined_call_operand.vmem [shape: f32[1,512], index: 4, kind: input, shape index: {}]   ;;  %s4605_s5 = inlined_call_operand.hbm [shape: bf16[512,256], index: 5, kind: input, shape index: {}]   ;;  %s4606_s6 = inlined_call_operand.vmem [shape: f32[1,256], index: 6, kind: input, shape index: {}]   ;;  %s4607_s7 = inlined_call_operand.hbm [shape: bf16[256,128], index: 7, kind: input, shape index: {}]   ;;  %s4608_s8 = inlined_call_operand.vmem [shape: f32[1,128], index: 8, kind: input, shape index: {}]   ;;  %s4609_s9 = inlined_call_operand.vmem [shape: f32[16,128], index: 9, kind: output, shape index: {}]  }
   0x1   :  { %15 = vsyncpa [#allocation5], 0 }
   0x2   :  { %16 = vsyncpa [#allocation8], 0  ;;  %s4394_s30 = smov [#allocation4]   ;;  %s4300_s13 = scalar_lea.hbm %s4603_s3, 32768 }
   0x3   :  { %s38_s10 = sshll.u32 %s4394_s30, 4  ;;  %p4301_p0 = scmp.ne.s32.totalorder %s4603_s3, %s4300_s13  ;;  %s39_s10 = int_to_ptr.vmem [resolvable:$true] %s38_s10 }
   0x4   :  { %p4304_p1 = scmp.lt.u32.totalorder %s4300_s13, %s4603_s3 }
   0x6   :  { %p4306_p2 = pnand %p4304_p1, %p4301_p0 }
   0x8   :  { %4309 = shalt.err (!%p4306_p2)
}
   0x9   :  { %s4310_s18 = scalar_lea.vmem %s39_s10, 32768  ;;  %p4315_p4 = scmp.lt.s32.totalorder %s39_s10, %s39_s10 }
   0xa   :  { %p4311_p3 = scmp.ne.s32.totalorder %s39_s10, %s4310_s18  ;;  %p4316_p5 = scmp.lt.s32.totalorder %s4310_s18, %s4310_s18 }
   0xc   :  { %p4317_p6 = por %p4316_p5, %p4315_p4 }
   0xe   :  { %p4318_p7 = pnand %p4317_p6, %p4311_p3 }
  0x10   :  { %4321 = shalt.err (!%p4318_p7)
}
  0x11   :  { %s4395_s19 = smov 256   ;;  %s4396_s20 = smov 16  }
  0x12   :  { %44 = dma.hbm_to_vmem [thread:$0]  %s4603_s3, 32768, %s39_s10, [#allocation5], %s4395_s19, %s4395_s19, %s4396_s20  }
  0x13   :  { %s4397_s23 = smov [#allocation2]   ;;  %s4322_s27 = scalar_lea.hbm %s4601_s1, 8192 }
  0x14   :  { %s24_s24 = sshll.u32 %s4397_s23, 4  ;;  %p4323_p8 = scmp.ne.s32.totalorder %s4601_s1, %s4322_s27  ;;  %s25_s24 = int_to_ptr.vmem [resolvable:$true] %s24_s24 }
  0x15   :  { %p4326_p9 = scmp.lt.u32.totalorder %s4322_s27, %s4601_s1 }
  0x17   :  { %p4328_p10 = pnand %p4326_p9, %p4323_p8 }
  0x19   :  { %4331 = shalt.err (!%p4328_p10)
}
  0x1a   :  { %s4332_s12 = scalar_lea.vmem %s25_s24, 8192  ;;  %p4337_p12 = scmp.lt.s32.totalorder %s25_s24, %s25_s24 }
  0x1b   :  { %p4333_p11 = scmp.ne.s32.totalorder %s25_s24, %s4332_s12  ;;  %p4338_p13 = scmp.lt.s32.totalorder %s4332_s12, %s4332_s12 }
  0x1d   :  { %p4339_p0 = por %p4338_p13, %p4337_p12 }
  0x1f   :  { %p4340_p1 = pnand %p4339_p0, %p4333_p11 }
  0x21   :  { %4343 = shalt.err (!%p4340_p1)
}
  0x22   :  { %s4398_s3 = smov 512   ;;  %s4399_s10 = smov 32  }
  0x23   :  { %30 = dma.hbm_to_vmem [thread:$0]  %s4601_s1, 8192, %s25_s24, [#allocation3], %s4398_s3, %s4398_s3, %s4399_s10  }
  0x24   :  { %s4400_s15 = smov [#allocation6]   ;;  %s4344_s19 = scalar_lea.hbm %s4605_s5, 8192 }
  0x25   :  { %s52_s16 = sshll.u32 %s4400_s15, 4  ;;  %p4345_p2 = scmp.ne.s32.totalorder %s4605_s5, %s4344_s19  ;;  %s53_s16 = int_to_ptr.vmem [resolvable:$true] %s52_s16 }
  0x26   :  { %p4348_p3 = scmp.lt.u32.totalorder %s4344_s19, %s4605_s5 }
  0x28   :  { %p4350_p4 = pnand %p4348_p3, %p4345_p2 }
  0x2a   :  { %4353 = shalt.err (!%p4350_p4)
}
  0x2b   :  { %s4354_s25 = scalar_lea.vmem %s53_s16, 8192  ;;  %p4359_p6 = scmp.lt.s32.totalorder %s53_s16, %s53_s16 }
  0x2c   :  { %p4355_p5 = scmp.ne.s32.totalorder %s53_s16, %s4354_s25  ;;  %p4360_p7 = scmp.lt.s32.totalorder %s4354_s25, %s4354_s25 }
  0x2e   :  { %p4361_p8 = por %p4360_p7, %p4359_p6 }
  0x30   :  { %p4362_p9 = pnand %p4361_p8, %p4355_p5 }
  0x32   :  { %4365 = shalt.err (!%p4362_p9)
}
  0x33   :  { %s4401_s1 = smov 128   ;;  %s4402_s24 = smov 8  }
  0x34   :  { %58 = dma.hbm_to_vmem [thread:$0]  %s4605_s5, 8192, %s53_s16, [#allocation5], %s4401_s1, %s4401_s1, %s4402_s24  }
  0x35   :  { %s4403_s28 = smov [#allocation7]   ;;  %s4366_s12 = scalar_lea.hbm %s4607_s7, 2048 }
  0x36   :  { %s66_s29 = sshll.u32 %s4403_s28, 4  ;;  %p4367_p10 = scmp.ne.s32.totalorder %s4607_s7, %s4366_s12  ;;  %s67_s29 = int_to_ptr.vmem [resolvable:$true] %s66_s29 }
  0x37   :  { %p4370_p11 = scmp.lt.u32.totalorder %s4366_s12, %s4607_s7 }
  0x39   :  { %p4372_p12 = pnand %p4370_p11, %p4367_p10 }
  0x3b   :  { %4375 = shalt.err (!%p4372_p12)
}
  0x3c   :  { %s4376_s15 = scalar_lea.vmem %s67_s29, 2048  ;;  %p4381_p0 = scmp.lt.s32.totalorder %s67_s29, %s67_s29 }
  0x3d   :  { %p4377_p13 = scmp.ne.s32.totalorder %s67_s29, %s4376_s15  ;;  %p4382_p1 = scmp.lt.s32.totalorder %s4376_s15, %s4376_s15 }
  0x3f   :  { %p4383_p2 = por %p4382_p1, %p4381_p0 }
  0x41   :  { %p4384_p3 = pnand %p4383_p2, %p4377_p13 }
  0x43   :  { %4387 = shalt.err (!%p4384_p3)
}
  0x44   :  { %s4404_s5 = smov 64   ;;  %s4405_s16 = smov 4  }
  0x45   :  { %72 = dma.hbm_to_vmem [thread:$0]  %s4607_s7, 2048, %s67_s29, [#allocation8], %s4404_s5, %s4404_s5, %s4405_s16  }
  0x46   :  { %4388 = dma.done.wait [#allocation3], 8192  }
  0x47   :  { %4389 = vsyncadd [#allocation3], 4294959104 }
  0x48   :  { %4390 = dma.done.wait [#allocation5], 40960  }
  0x49   :  { %4391 = vsyncadd [#allocation5], 4294926336 }
  0x4a   :  { %4392 = dma.done.wait [#allocation8], 2048  }
  0x4b   :  { %4393 = vsyncadd [#allocation8], 4294965248  ;;  %v4406_v0 = vmov 0   ;;  %v91_v1 = vld [vmem:[#allocation2] sm:$0xff]  ;;  %v93_v18 = vld [vmem:[#allocation2 + $0x10] sm:$0xff] }
  0x4c   :  { %549 = vmatprep.mubr.bf16.mxu1 %v4406_v0  ;;  %635 = vmatprep.mubr.bf16.mxu0 %v4406_v0  ;;  %v95_v2 = vld [vmem:[#allocation2 + $0x20] sm:$0xff]  ;;  %v97_v19 = vld [vmem:[#allocation2 + $0x30] sm:$0xff]  ;;  %v92_v49 = vld [vmem:[#allocation2 + $0x8] sm:$0xff] }
  0x4d   :  { %v99_v3 = vld [vmem:[#allocation2 + $0x40] sm:$0xff]  ;;  %v3329_v4 = vcombine.high %v91_v1, %v95_v2  ;;  %v3328_v5 = vcombine.low %v91_v1, %v95_v2  ;;  %v3333_v21 = vcombine.high %v93_v18, %v97_v19  ;;  %v3332_v22 = vcombine.low %v93_v18, %v97_v19  ;;  %v101_v23 = vld [vmem:[#allocation2 + $0x50] sm:$0xff]  ;;  %v96_v54 = vld [vmem:[#allocation2 + $0x28] sm:$0xff] }
  0x4e   :  { %v103_v6 = vld [vmem:[#allocation2 + $0x60] sm:$0xff]  ;;  %v105_v24 = vld [vmem:[#allocation2 + $0x70] sm:$0xff]  ;;  %v89_v58 = vld [vmem:[%s4600_s0 + $0x8] sm:$0xff]  ;;  %v3331_v61 = vcombine.high %v92_v49, %v96_v54 }
  0x4f   :  { %v3337_v7 = vcombine.high %v99_v3, %v103_v6  ;;  %v107_v8 = vld [vmem:[#allocation2 + $0x80] sm:$0xff]  ;;  %517 = vmatprep.subr.bf16.mxu1 %v3329_v4  ;;  %v3336_v10 = vcombine.low %v99_v3, %v103_v6  ;;  %v3341_v26 = vcombine.high %v101_v23, %v105_v24  ;;  %v109_v27 = vld [vmem:[#allocation2 + $0x90] sm:$0xff]  ;;  %603 = vmatprep.subr.bf16.mxu0 %v3333_v21  ;;  %v100_v59 = vld [vmem:[#allocation2 + $0x48] sm:$0xff] }
  0x50   :  { %v111_v9 = vld [vmem:[#allocation2 + $0xa0] sm:$0xff]  ;;  %518 = vmatpush1.bf16.msra.mxu1 %v3328_v5  ;;  %v113_v28 = vld [vmem:[#allocation2 + $0xb0] sm:$0xff]  ;;  %604 = vmatpush1.bf16.msra.mxu0 %v3332_v22  ;;  %v3340_v31 = vcombine.low %v101_v23, %v105_v24  ;;  %v104_v62 = vld [vmem:[#allocation2 + $0x68] sm:$0xff]  ;;  %v3330_v4 = vcombine.low %v92_v49, %v96_v54 }
  0x51   :  { %519 = vmatprep.subr.bf16.mxu1 %v3337_v7  ;;  %v3345_v11 = vcombine.high %v107_v8, %v111_v9  ;;  %v115_v12 = vld [vmem:[#allocation2 + $0xc0] sm:$0xff]  ;;  %v3344_v14 = vcombine.low %v107_v8, %v111_v9  ;;  %605 = vmatprep.subr.bf16.mxu0 %v3341_v26  ;;  %v3349_v33 = vcombine.high %v109_v27, %v113_v28  ;;  %v117_v35 = vld [vmem:[#allocation2 + $0xd0] sm:$0xff]  ;;  %v108_v5 = vld [vmem:[#allocation2 + $0x88] sm:$0xff] }
  0x52   :  { %v119_v13 = vld [vmem:[#allocation2 + $0xe0] sm:$0xff]  ;;  %v121_v36 = vld [vmem:[#allocation2 + $0xf0] sm:$0xff]  ;;  %v3348_v39 = vcombine.low %v109_v27, %v113_v28  ;;  %v3339_v6 = vcombine.high %v100_v59, %v104_v62  ;;  %v124_v21 = vld [vmem:[#allocation2 + $0x108] sm:$0xff] }
  0x53   :  { %v3353_v15 = vcombine.high %v115_v12, %v119_v13  ;;  %v123_v16 = vld [vmem:[#allocation2 + $0x100] sm:$0xff]  ;;  %v3352_v20 = vcombine.low %v115_v12, %v119_v13  ;;  %v3357_v41 = vcombine.high %v117_v35, %v121_v36  ;;  %v125_v44 = vld [vmem:[#allocation2 + $0x110] sm:$0xff]  ;;  %v3356_v47 = vcombine.low %v117_v35, %v121_v36  ;;  %v128_v22 = vld [vmem:[#allocation2 + $0x128] sm:$0xff] }
  0x54   :  { %520 = vmatpush1.bf16.msra.mxu1 %v3336_v10  ;;  %v127_v17 = vld [vmem:[#allocation2 + $0x120] sm:$0xff]  ;;  %606 = vmatpush1.bf16.msra.mxu0 %v3340_v31  ;;  %v129_v45 = vld [vmem:[#allocation2 + $0x130] sm:$0xff]  ;;  %v112_v10 = vld [vmem:[#allocation2 + $0xa8] sm:$0xff]  ;;  %v3338_v12 = vcombine.low %v100_v59, %v104_v62  ;;  %v3363_v26 = vcombine.high %v124_v21, %v128_v22 }
  0x55   :  { %521 = vmatprep.subr.bf16.mxu1 %v3345_v11  ;;  %v3361_v25 = vcombine.high %v123_v16, %v127_v17  ;;  %v131_v29 = vld [vmem:[#allocation2 + $0x140] sm:$0xff]  ;;  %v3360_v32 = vcombine.low %v123_v16, %v127_v17  ;;  %607 = vmatprep.subr.bf16.mxu0 %v3349_v33  ;;  %v3365_v50 = vcombine.high %v125_v44, %v129_v45  ;;  %v133_v52 = vld [vmem:[#allocation2 + $0x150] sm:$0xff]  ;;  %v120_v16 = vld [vmem:[#allocation2 + $0xe8] sm:$0xff] }
  0x56   :  { %v135_v30 = vld [vmem:[#allocation2 + $0x160] sm:$0xff]  ;;  %v137_v53 = vld [vmem:[#allocation2 + $0x170] sm:$0xff]  ;;  %v3364_v56 = vcombine.low %v125_v44, %v129_v45  ;;  %v3346_v18 = vcombine.low %v108_v5, %v112_v10  ;;  %v132_v27 = vld [vmem:[#allocation2 + $0x148] sm:$0xff] }
  0x57   :  { %v3369_v34 = vcombine.high %v131_v29, %v135_v30  ;;  %v139_v37 = vld [vmem:[#allocation2 + $0x180] sm:$0xff]  ;;  %v3368_v40 = vcombine.low %v131_v29, %v135_v30  ;;  %v3373_v60 = vcombine.high %v133_v52, %v137_v53  ;;  %v141_v63 = vld [vmem:[#allocation2 + $0x190] sm:$0xff]  ;;  %v3372_v3 = vcombine.low %v133_v52, %v137_v53  ;;  %v136_v28 = vld [vmem:[#allocation2 + $0x168] sm:$0xff] }
  0x58   :  { %522 = vmatpush1.bf16.msra.mxu1 %v3344_v14  ;;  %v143_v38 = vld [vmem:[#allocation2 + $0x1a0] sm:$0xff]  ;;  %608 = vmatpush1.bf16.msra.mxu0 %v3348_v39  ;;  %v145_v1 = vld [vmem:[#allocation2 + $0x1b0] sm:$0xff]  ;;  %v3347_v14 = vcombine.high %v108_v5, %v112_v10  ;;  %v3362_v30 = vcombine.low %v124_v21, %v128_v22  ;;  %v140_v33 = vld [vmem:[#allocation2 + $0x188] sm:$0xff]  ;;  %v3370_v36 = vcombine.low %v132_v27, %v136_v28 }
  0x59   :  { %523 = vmatprep.subr.bf16.mxu1 %v3353_v15  ;;  %v3377_v42 = vcombine.high %v139_v37, %v143_v38  ;;  %v147_v43 = vld [vmem:[#allocation2 + $0x1c0] sm:$0xff]  ;;  %v3376_v48 = vcombine.low %v139_v37, %v143_v38  ;;  %609 = vmatprep.subr.bf16.mxu0 %v3357_v41  ;;  %v3381_v7 = vcombine.high %v141_v63, %v145_v1  ;;  %v149_v8 = vld [vmem:[#allocation2 + $0x1d0] sm:$0xff]  ;;  %v116_v15 = vld [vmem:[#allocation2 + $0xc8] sm:$0xff] }
  0x5a   :  { %v151_v46 = vld [vmem:[#allocation2 + $0x1e0] sm:$0xff]  ;;  %v153_v9 = vld [vmem:[#allocation2 + $0x1f0] sm:$0xff]  ;;  %v3380_v11 = vcombine.low %v141_v63, %v145_v1  ;;  %v3354_v24 = vcombine.low %v116_v15, %v120_v16  ;;  %v148_v39 = vld [vmem:[#allocation2 + $0x1c8] sm:$0xff] }
  0x5b   :  { %v3385_v51 = vcombine.high %v147_v43, %v151_v46  ;;  %v88_v55 = vld [vmem:[%s4600_s0] sm:$0xff]  ;;  %v3384_v57 = vcombine.low %v147_v43, %v151_v46  ;;  %v3389_v13 = vcombine.high %v149_v8, %v153_v9  ;;  %v3388_v17 = vcombine.low %v149_v8, %v153_v9  ;;  %v94_v43 = vld [vmem:[#allocation2 + $0x18] sm:$0xff] }
  0x5c   :  { %524 = vmatpush1.bf16.msra.mxu1 %v3352_v20  ;;  %610 = vmatpush1.bf16.msra.mxu0 %v3356_v47  ;;  %v4513_v2 = vpack.c.bf16 %v89_v58, %v88_v55  ;;  %v3806_v19 = vld [vmem:[#allocation4 + $0x4] ss:$16 sps:$4 sm:$0xff]   ;;  %v3355_v20 = vcombine.high %v116_v15, %v120_v16  ;;  %v3804_v23 = vld [vmem:[#allocation4] ss:$16 sps:$4 sm:$0xff]   ;;  %v98_v44 = vld [vmem:[#allocation2 + $0x38] sm:$0xff] }
  0x5d   :  { %525 = vmatprep.subr.bf16.mxu1 %v3361_v25  ;;  %611 = vmatprep.subr.bf16.mxu0 %v3365_v50  ;;  %v3812_v25 = vld [vmem:[#allocation4 + $0x24] ss:$16 sps:$4 sm:$0xff]   ;;  %v3810_v29 = vld [vmem:[#allocation4 + $0x20] ss:$16 sps:$4 sm:$0xff]   ;;  %v102_v50 = vld [vmem:[#allocation2 + $0x58] sm:$0xff]  ;;  %v3335_v52 = vcombine.high %v94_v43, %v98_v44  ;;  %v3334_v55 = vcombine.low %v94_v43, %v98_v44 }
  0x5e   :  { %v3818_v31 = vld [vmem:[#allocation4 + $0x44] ss:$16 sps:$4 sm:$0xff]   ;;  %v3816_v35 = vld [vmem:[#allocation4 + $0x40] ss:$16 sps:$4 sm:$0xff]   ;;  %v118_v62 = vld [vmem:[#allocation2 + $0xd8] sm:$0xff] }
  0x5f   :  { %v3824_v37 = vld [vmem:[#allocation4 + $0x64] ss:$16 sps:$4 sm:$0xff]   ;;  %v3822_v41 = vld [vmem:[#allocation4 + $0x60] ss:$16 sps:$4 sm:$0xff]   ;;  %v122_v63 = vld [vmem:[#allocation2 + $0xf8] sm:$0xff] }
  0x60   :  { %526 = vmatpush1.bf16.msra.mxu1 %v3360_v32  ;;  %612 = vmatpush1.bf16.msra.mxu0 %v3364_v56  ;;  %v3371_v32 = vcombine.high %v132_v27, %v136_v28  ;;  %v3830_v45 = vld [vmem:[#allocation4 + $0x84] ss:$16 sps:$4 sm:$0xff]   ;;  %v3828_v47 = vld [vmem:[#allocation4 + $0x80] ss:$16 sps:$4 sm:$0xff]   ;;  %v110_v56 = vld [vmem:[#allocation2 + $0x98] sm:$0xff]  ;;  %v3359_v8 = vcombine.high %v118_v62, %v122_v63 }
  0x61   :  { %527 = vmatprep.subr.bf16.mxu1 %v3369_v34  ;;  %613 = vmatprep.subr.bf16.mxu0 %v3373_v60  ;;  %v144_v34 = vld [vmem:[#allocation2 + $0x1a8] sm:$0xff]  ;;  %v3834_v53 = vld [vmem:[#allocation4 + $0xa0] ss:$16 sps:$4 sm:$0xff]   ;;  %v3842_v54 = vld [vmem:[#allocation4 + $0xc4] ss:$16 sps:$4 sm:$0xff]  }
  0x62   :  { %v3379_v38 = vcombine.high %v140_v33, %v144_v34  ;;  %v3840_v59 = vld [vmem:[#allocation4 + $0xc0] ss:$16 sps:$4 sm:$0xff]   ;;  %v3848_v60 = vld [vmem:[#allocation4 + $0xe4] ss:$16 sps:$4 sm:$0xff]   ;;  %v3837_v43 = vld [vmem:[#allocation4 + $0xa8] ss:$16 sps:$4 sm:$0xff]  }
  0x63   :  { %v3852_v9 = vld [vmem:[#allocation4 + $0x100] ss:$16 sps:$4 sm:$0xff]   ;;  %v3860_v10 = vld [vmem:[#allocation4 + $0x124] ss:$16 sps:$4 sm:$0xff]  }
  0x64   :  { %528 = vmatpush1.bf16.msra.mxu1 %v3368_v40  ;;  %614 = vmatpush1.bf16.msra.mxu0 %v3372_v3  ;;  %v152_v40 = vld [vmem:[#allocation2 + $0x1e8] sm:$0xff]  ;;  %v3846_v3 = vld [vmem:[#allocation4 + $0xe0] ss:$16 sps:$4 sm:$0xff]   ;;  %v3866_v15 = vld [vmem:[#allocation4 + $0x144] ss:$16 sps:$4 sm:$0xff]  }
  0x65   :  { %529 = vmatprep.subr.bf16.mxu1 %v3377_v42  ;;  %615 = vmatprep.subr.bf16.mxu0 %v3381_v7  ;;  %v3378_v42 = vcombine.low %v140_v33, %v144_v34  ;;  %v3387_v46 = vcombine.high %v148_v39, %v152_v40  ;;  %v3386_v49 = vcombine.low %v148_v39, %v152_v40  ;;  %v130_v7 = vld [vmem:[#allocation2 + $0x138] sm:$0xff]  ;;  %v3872_v21 = vld [vmem:[#allocation4 + $0x164] ss:$16 sps:$4 sm:$0xff]  }
  0x66   :  { %v3878_v27 = vld [vmem:[#allocation4 + $0x184] ss:$16 sps:$4 sm:$0xff]   ;;  %v3807_v33 = vld [vmem:[#allocation4 + $0x8] ss:$16 sps:$4 sm:$0xff]   ;;  %v3815_v34 = vld [vmem:[#allocation4 + $0x2c] ss:$16 sps:$4 sm:$0xff]  }
  0x67   :  { %v3825_v39 = vld [vmem:[#allocation4 + $0x68] ss:$16 sps:$4 sm:$0xff]   ;;  %v3833_v40 = vld [vmem:[#allocation4 + $0x8c] ss:$16 sps:$4 sm:$0xff]   ;;  %v3884_v44 = vld [vmem:[#allocation4 + $0x1a4] ss:$16 sps:$4 sm:$0xff]  }
  0x68   :  { %530 = vmatpush1.bf16.msra.mxu1 %v3376_v48  ;;  %616 = vmatpush1.bf16.msra.mxu0 %v3380_v11  ;;  %v3836_v48 = vld [vmem:[#allocation4 + $0xa4] ss:$16 sps:$4 sm:$0xff]   ;;  %v3358_v11 = vcombine.low %v118_v62, %v122_v63  ;;  %v3881_v62 = vld [vmem:[#allocation4 + $0x18c] ss:$16 sps:$4 sm:$0xff]   ;;  %v3879_v63 = vld [vmem:[#allocation4 + $0x188] ss:$16 sps:$4 sm:$0xff]  }
  0x69   :  { %531 = vmatprep.subr.bf16.mxu1 %v3385_v51  ;;  %617 = vmatprep.subr.bf16.mxu0 %v3389_v13  ;;  %v106_v51 = vld [vmem:[#allocation2 + $0x78] sm:$0xff] }
  0x6a   :  { %v3343_v58 = vcombine.high %v102_v50, %v106_v51 }
  0x6c   :  { %532 = vmatpush1.bf16.msra.mxu1 %v3384_v57  ;;  %618 = vmatpush1.bf16.msra.mxu0 %v3388_v17  ;;  %v114_v57 = vld [vmem:[#allocation2 + $0xb8] sm:$0xff] }
  0x6d   :  { %560 = vmatprep.subr.bf16.mxu1 %v3331_v61  ;;  %2287 = vmatprep.subr.bf16.mxu0 %v3806_v19  ;;  %v3342_v61 = vcombine.low %v102_v50, %v106_v51  ;;  %v3351_v1 = vcombine.high %v110_v56, %v114_v57  ;;  %v3350_v5 = vcombine.low %v110_v56, %v114_v57  ;;  %v142_v17 = vld [vmem:[#allocation2 + $0x198] sm:$0xff]  ;;  %v3896_v51 = vld [vmem:[#allocation4 + $0x1e4] ss:$16 sps:$4 sm:$0xff]  }
  0x6e   :  { %v3849_v50 = vld [vmem:[#allocation4 + $0xe8] ss:$16 sps:$4 sm:$0xff]   ;;  %v3863_v56 = vld [vmem:[#allocation4 + $0x12c] ss:$16 sps:$4 sm:$0xff]  }
  0x6f   :  { %550 = vmatmul.mubr.bf16.vlgmr.msra.gmra.mrb[0].mxu1 %v4513_v2  ;;  %636 = vmatmul.mubr.bf16.vlgmr.msra.gmra.mrb[0].mxu0 %v4513_v2  ;;  %v3861_v57 = vld [vmem:[#allocation4 + $0x128] ss:$16 sps:$4 sm:$0xff]  }
  0x70   :  { %561 = vmatpush1.bf16.msra.mxu1 %v3330_v4  ;;  %592 = vmatprep.mubr.bf16.mxu1 %v4406_v0  ;;  %v3854_v4 = vld [vmem:[#allocation4 + $0x104] ss:$16 sps:$4 sm:$0xff]  }
  0x71   :  { %562 = vmatprep.subr.bf16.mxu1 %v3339_v6  ;;  %2288 = vmatpush1.bf16.msra.mxu0 %v3804_v23  ;;  %v126_v6 = vld [vmem:[#allocation2 + $0x118] sm:$0xff] }
  0x72   :  { %2289 = vmatprep.subr.bf16.mxu0 %v3812_v25  ;;  %v3367_v13 = vcombine.high %v126_v6, %v130_v7  ;;  %v3366_v16 = vcombine.low %v126_v6, %v130_v7  ;;  %v150_v23 = vld [vmem:[#allocation2 + $0x1d8] sm:$0xff] }
  0x73   :  { %v3899_v6 = vld [vmem:[#allocation4 + $0x1ec] ss:$16 sps:$4 sm:$0xff]   ;;  %v3897_v7 = vld [vmem:[#allocation4 + $0x1e8] ss:$16 sps:$4 sm:$0xff]  }
  0x74   :  { %563 = vmatpush1.bf16.msra.mxu1 %v3338_v12  ;;  %v134_v12 = vld [vmem:[#allocation2 + $0x158] sm:$0xff] }
  0x75   :  { %564 = vmatprep.subr.bf16.mxu1 %v3347_v14  ;;  %2290 = vmatpush1.bf16.msra.mxu0 %v3810_v29  ;;  %v3858_v14 = vld [vmem:[#allocation4 + $0x120] ss:$16 sps:$4 sm:$0xff]  }
  0x76   :  { %2291 = vmatprep.subr.bf16.mxu0 %v3818_v31  ;;  %v3809_v31 = vld [vmem:[#allocation4 + $0xc] ss:$16 sps:$4 sm:$0xff]  }
  0x78   :  { %565 = vmatpush1.bf16.msra.mxu1 %v3346_v18  ;;  %v146_v18 = vld [vmem:[#allocation2 + $0x1b8] sm:$0xff] }
  0x79   :  { %566 = vmatprep.subr.bf16.mxu1 %v3355_v20  ;;  %2292 = vmatpush1.bf16.msra.mxu0 %v3816_v35  ;;  %v3864_v20 = vld [vmem:[#allocation4 + $0x140] ss:$16 sps:$4 sm:$0xff]   ;;  %v3383_v25 = vcombine.high %v142_v17, %v146_v18  ;;  %v3382_v28 = vcombine.low %v142_v17, %v146_v18  ;;  %v3813_v35 = vld [vmem:[#allocation4 + $0x28] ss:$16 sps:$4 sm:$0xff]  }
  0x7a   :  { %2293 = vmatprep.subr.bf16.mxu0 %v3824_v37  ;;  %v3819_v37 = vld [vmem:[#allocation4 + $0x48] ss:$16 sps:$4 sm:$0xff]  }
  0x7c   :  { %567 = vmatpush1.bf16.msra.mxu1 %v3354_v24  ;;  %v154_v24 = vld [vmem:[#allocation2 + $0x1f8] sm:$0xff] }
  0x7d   :  { %568 = vmatprep.subr.bf16.mxu1 %v3363_v26  ;;  %2294 = vmatpush1.bf16.msra.mxu0 %v3822_v41  ;;  %v3870_v26 = vld [vmem:[#allocation4 + $0x160] ss:$16 sps:$4 sm:$0xff]   ;;  %v3391_v29 = vcombine.high %v150_v23, %v154_v24  ;;  %v3831_v41 = vld [vmem:[#allocation4 + $0x88] ss:$16 sps:$4 sm:$0xff]  }
  0x7e   :  { %2295 = vmatprep.subr.bf16.mxu0 %v3830_v45  ;;  %v3882_v45 = vld [vmem:[#allocation4 + $0x1a0] ss:$16 sps:$4 sm:$0xff]  }
  0x80   :  { %569 = vmatpush1.bf16.msra.mxu1 %v3362_v30  ;;  %v3876_v30 = vld [vmem:[#allocation4 + $0x180] ss:$16 sps:$4 sm:$0xff]  }
  0x81   :  { %570 = vmatprep.subr.bf16.mxu1 %v3371_v32  ;;  %2296 = vmatpush1.bf16.msra.mxu0 %v3828_v47  ;;  %v3390_v32 = vcombine.low %v150_v23, %v154_v24  ;;  %v3890_v47 = vld [vmem:[#allocation4 + $0x1c4] ss:$16 sps:$4 sm:$0xff]  }
  0x82   :  { %2297 = vmatprep.subr.bf16.mxu0 %v3836_v48  ;;  %v3851_v48 = vld [vmem:[#allocation4 + $0xec] ss:$16 sps:$4 sm:$0xff]  }
  0x84   :  { %571 = vmatpush1.bf16.msra.mxu1 %v3370_v36  ;;  %v3821_v36 = vld [vmem:[#allocation4 + $0x4c] ss:$16 sps:$4 sm:$0xff]  }
  0x85   :  { %572 = vmatprep.subr.bf16.mxu1 %v3379_v38  ;;  %2298 = vmatpush1.bf16.msra.mxu0 %v3834_v53  ;;  %v3827_v38 = vld [vmem:[#allocation4 + $0x6c] ss:$16 sps:$4 sm:$0xff]   ;;  %v3894_v53 = vld [vmem:[#allocation4 + $0x1e0] ss:$16 sps:$4 sm:$0xff]  }
  0x86   :  { %2299 = vmatprep.subr.bf16.mxu0 %v3842_v54  ;;  %v3855_v54 = vld [vmem:[#allocation4 + $0x108] ss:$16 sps:$4 sm:$0xff]  }
  0x88   :  { %573 = vmatpush1.bf16.msra.mxu1 %v3378_v42  ;;  %v3839_v42 = vld [vmem:[#allocation4 + $0xac] ss:$16 sps:$4 sm:$0xff]  }
  0x89   :  { %574 = vmatprep.subr.bf16.mxu1 %v3387_v46  ;;  %2300 = vmatpush1.bf16.msra.mxu0 %v3840_v59  ;;  %v3843_v46 = vld [vmem:[#allocation4 + $0xc8] ss:$16 sps:$4 sm:$0xff]  }
  0x8a   :  { %2301 = vmatprep.subr.bf16.mxu0 %v3848_v60  ;;  %v3867_v59 = vld [vmem:[#allocation4 + $0x148] ss:$16 sps:$4 sm:$0xff]   ;;  %v3875_v60 = vld [vmem:[#allocation4 + $0x16c] ss:$16 sps:$4 sm:$0xff]  }
  0x8c   :  { %575 = vmatpush1.bf16.msra.mxu1 %v3386_v49  ;;  %v3888_v49 = vld [vmem:[#allocation4 + $0x1c0] ss:$16 sps:$4 sm:$0xff]  }
  0x8d   :  { %646 = vmatprep.subr.bf16.mxu1 %v3335_v52  ;;  %2302 = vmatpush1.bf16.msra.mxu0 %v3846_v3  ;;  %v3857_v52 = vld [vmem:[#allocation4 + $0x10c] ss:$16 sps:$4 sm:$0xff]   ;;  %v3885_v3 = vld [vmem:[#allocation4 + $0x1a8] ss:$16 sps:$4 sm:$0xff]  }
  0x8e   :  { %2303 = vmatprep.subr.bf16.mxu0 %v3854_v4  ;;  %v3893_v4 = vld [vmem:[#allocation4 + $0x1cc] ss:$16 sps:$4 sm:$0xff]  }
  0x8f   :  { %593 = vmatmul.mubr.bf16.vlgmr.msra.gmra.mrb[4].mxu1 %v4513_v2 }
  0x90   :  { %647 = vmatpush1.bf16.msra.mxu1 %v3334_v55  ;;  %678 = vmatprep.mubr.bf16.mxu1 %v4406_v0  ;;  %v138_v0 = vld [vmem:[#allocation2 + $0x178] sm:$0xff]  ;;  %v3902_v55 = vld [vmem:[#allocation4 + $0x204] ss:$16 sps:$4 sm:$0xff]  }
  0x91   :  { %648 = vmatprep.subr.bf16.mxu1 %v3343_v58  ;;  %2304 = vmatpush1.bf16.msra.mxu0 %v3852_v9  ;;  %v3375_v19 = vcombine.high %v134_v12, %v138_v0  ;;  %v3374_v22 = vcombine.low %v134_v12, %v138_v0  ;;  %v3869_v58 = vld [vmem:[#allocation4 + $0x14c] ss:$16 sps:$4 sm:$0xff]   ;;  %v157_v9 = vlaneseq  ;;  %v4529_v12 = vld [vmem:[%s4602_s2] sm:$0xff] }
  0x92   :  { %2305 = vmatprep.subr.bf16.mxu0 %v3860_v10 }
  0x93   :  { %v4521_v10 = vshrl.u32 %v157_v9, 7  ;;  %v3924_v9 = vld [vmem:[#allocation4 + $0x280] ss:$16 sps:$4 sm:$0xff]  }
  0x94   :  { %649 = vmatpush1.bf16.msra.mxu1 %v3342_v61  ;;  %v3873_v61 = vld [vmem:[#allocation4 + $0x168] ss:$16 sps:$4 sm:$0xff]  }
  0x95   :  { %650 = vmatprep.subr.bf16.mxu1 %v3351_v1  ;;  %2306 = vmatpush1.bf16.msra.mxu0 %v3858_v14  ;;  %v3887_v1 = vld [vmem:[#allocation4 + $0x1ac] ss:$16 sps:$4 sm:$0xff]   ;;  %v4532_v0 = vsub.s32 1, %v4521_v10 }
  0x96   :  { %2307 = vmatprep.subr.bf16.mxu0 %v3866_v15 }
  0x97   :  { %v164_v14 = vrot.slane %v4529_v12, %v4532_v0 }
  0x98   :  { %651 = vmatpush1.bf16.msra.mxu1 %v3350_v5  ;;  %v3891_v5 = vld [vmem:[#allocation4 + $0x1c8] ss:$16 sps:$4 sm:$0xff]  }
  0x99   :  { %652 = vmatprep.subr.bf16.mxu1 %v3359_v8  ;;  %2308 = vmatpush1.bf16.msra.mxu0 %v3864_v20  ;;  %v3905_v8 = vld [vmem:[#allocation4 + $0x20c] ss:$16 sps:$4 sm:$0xff]  }
  0x9a   :  { %2309 = vmatprep.subr.bf16.mxu0 %v3872_v21 }
  0x9c   :  { %653 = vmatpush1.bf16.msra.mxu1 %v3358_v11  ;;  %v4524_v11 = vsub.s32 0, %v4521_v10 }
  0x9d   :  { %654 = vmatprep.subr.bf16.mxu1 %v3367_v13  ;;  %2310 = vmatpush1.bf16.msra.mxu0 %v3870_v26 }
  0x9e   :  { %2311 = vmatprep.subr.bf16.mxu0 %v3878_v27  ;;  %v160_v13 = vrot.slane %v4529_v12, %v4524_v11  ;;  %v179_v27 = vsub.s32 5, %v4521_v10 }
  0xa0   :  { %655 = vmatpush1.bf16.msra.mxu1 %v3366_v16 }
  0xa1   :  { %656 = vmatprep.subr.bf16.mxu1 %v3375_v19  ;;  %2312 = vmatpush1.bf16.msra.mxu0 %v3876_v30 }
  0xa2   :  { %2313 = vmatprep.subr.bf16.mxu0 %v3884_v44  ;;  %v3906_v44 = vld [vmem:[#allocation4 + $0x220] ss:$16 sps:$4 sm:$0xff]  }
  0xa4   :  { %657 = vmatpush1.bf16.msra.mxu1 %v3374_v22 }
  0xa5   :  { %658 = vmatprep.subr.bf16.mxu1 %v3383_v25  ;;  %2314 = vmatpush1.bf16.msra.mxu0 %v3882_v45  ;;  %v175_v25 = vsub.s32 4, %v4521_v10 }
  0xa6   :  { %2315 = vmatprep.subr.bf16.mxu0 %v3890_v47 }
  0xa8   :  { %659 = vmatpush1.bf16.msra.mxu1 %v3382_v28 }
  0xa9   :  { %660 = vmatprep.subr.bf16.mxu1 %v3391_v29  ;;  %2316 = vmatpush1.bf16.msra.mxu0 %v3888_v49 }
  0xaa   :  { %2317 = vmatprep.subr.bf16.mxu0 %v3896_v51  ;;  %v3917_v51 = vld [vmem:[#allocation4 + $0x24c] ss:$16 sps:$4 sm:$0xff]  }
  0xac   :  { %661 = vmatpush1.bf16.msra.mxu1 %v3390_v32 }
  0xad   :  { %2459 = vmatprep.subr.bf16.mxu1 %v3809_v31  ;;  %2318 = vmatpush1.bf16.msra.mxu0 %v3894_v53 }
  0xae   :  { %2330 = vmatprep.subr.bf16.mxu0 %v3902_v55 }
  0xaf   :  { %679 = vmatmul.mubr.bf16.vlgmr.msra.gmra.mrb[8].mxu1 %v4513_v2  ;;  %v3845_v2 = vld [vmem:[#allocation4 + $0xcc] ss:$16 sps:$4 sm:$0xff]  }
  0xb0   :  { %2460 = vmatpush1.bf16.msra.mxu1 %v3807_v33  ;;  %v176_v33 = vrot.slane %v4529_v12, %v175_v25 }
  0xb1   :  { %2461 = vmatprep.subr.bf16.mxu1 %v3815_v34 }
  0xb4   :  { %2462 = vmatpush1.bf16.msra.mxu1 %v3813_v35  ;;  %v180_v35 = vrot.slane %v4529_v12, %v179_v27  ;;  %v3939_v27 = vld [vmem:[#allocation4 + $0x2c8] ss:$16 sps:$4 sm:$0xff]  }
  0xb5   :  { %2463 = vmatprep.subr.bf16.mxu1 %v3821_v36 }
  0xb8   :  { %2464 = vmatpush1.bf16.msra.mxu1 %v3819_v37  ;;  %v3900_v37 = vld [vmem:[#allocation4 + $0x200] ss:$16 sps:$4 sm:$0xff]  }
  0xb9   :  { %2465 = vmatprep.subr.bf16.mxu1 %v3827_v38  ;;  %v3903_v38 = vld [vmem:[#allocation4 + $0x208] ss:$16 sps:$4 sm:$0xff]  }
  0xbc   :  { %2466 = vmatpush1.bf16.msra.mxu1 %v3825_v39  ;;  %v3908_v39 = vld [vmem:[#allocation4 + $0x224] ss:$16 sps:$4 sm:$0xff]  }
  0xbd   :  { %2467 = vmatprep.subr.bf16.mxu1 %v3833_v40  ;;  %v3911_v40 = vld [vmem:[#allocation4 + $0x22c] ss:$16 sps:$4 sm:$0xff]  }
  0xc0   :  { %2468 = vmatpush1.bf16.msra.mxu1 %v3831_v41 }
  0xc1   :  { %2469 = vmatprep.subr.bf16.mxu1 %v3839_v42 }
  0xc4   :  { %2470 = vmatpush1.bf16.msra.mxu1 %v3837_v43 }
  0xc5   :  { %2471 = vmatprep.subr.bf16.mxu1 %v3845_v2 }
  0xc8   :  { %2472 = vmatpush1.bf16.msra.mxu1 %v3843_v46  ;;  %v3909_v46 = vld [vmem:[#allocation4 + $0x228] ss:$16 sps:$4 sm:$0xff]  }
  0xc9   :  { %2473 = vmatprep.subr.bf16.mxu1 %v3851_v48 }
  0xcc   :  { %2474 = vmatpush1.bf16.msra.mxu1 %v3849_v50  ;;  %v3914_v50 = vld [vmem:[#allocation4 + $0x244] ss:$16 sps:$4 sm:$0xff]  }
  0xcd   :  { %2475 = vmatprep.subr.bf16.mxu1 %v3857_v52 }
  0xd0   :  { %2476 = vmatpush1.bf16.msra.mxu1 %v3855_v54 }
  0xd1   :  { %2477 = vmatprep.subr.bf16.mxu1 %v3863_v56 }
  0xd4   :  { %2478 = vmatpush1.bf16.msra.mxu1 %v3861_v57 }
  0xd5   :  { %2479 = vmatprep.subr.bf16.mxu1 %v3869_v58  ;;  %v3912_v58 = vld [vmem:[#allocation4 + $0x240] ss:$16 sps:$4 sm:$0xff]  }
  0xd8   :  { %2480 = vmatpush1.bf16.msra.mxu1 %v3867_v59  ;;  %v3915_v59 = vld [vmem:[#allocation4 + $0x248] ss:$16 sps:$4 sm:$0xff]  }
  0xd9   :  { %2481 = vmatprep.subr.bf16.mxu1 %v3875_v60 }
  0xdc   :  { %2482 = vmatpush1.bf16.msra.mxu1 %v3873_v61  ;;  %v3920_v61 = vld [vmem:[#allocation4 + $0x264] ss:$16 sps:$4 sm:$0xff]  }
  0xdd   :  { %2483 = vmatprep.subr.bf16.mxu1 %v3881_v62  ;;  %v3923_v62 = vld [vmem:[#allocation4 + $0x26c] ss:$16 sps:$4 sm:$0xff]  }
  0xe0   :  { %2484 = vmatpush1.bf16.msra.mxu1 %v3879_v63 }
  0xe1   :  { %2485 = vmatprep.subr.bf16.mxu1 %v3887_v1 }
  0xe4   :  { %2486 = vmatpush1.bf16.msra.mxu1 %v3885_v3 }
  0xe5   :  { %2487 = vmatprep.subr.bf16.mxu1 %v3893_v4  ;;  %v3918_v4 = vld [vmem:[#allocation4 + $0x260] ss:$16 sps:$4 sm:$0xff]  }
  0xe8   :  { %2488 = vmatpush1.bf16.msra.mxu1 %v3891_v5  ;;  %v3921_v5 = vld [vmem:[#allocation4 + $0x268] ss:$16 sps:$4 sm:$0xff]  }
  0xe9   :  { %2489 = vmatprep.subr.bf16.mxu1 %v3899_v6  ;;  %v3926_v6 = vld [vmem:[#allocation4 + $0x284] ss:$16 sps:$4 sm:$0xff]  }
  0xec   :  { %2490 = vmatpush1.bf16.msra.mxu1 %v3897_v7  ;;  %v3929_v7 = vld [vmem:[#allocation4 + $0x28c] ss:$16 sps:$4 sm:$0xff]  }
  0xed   :  { %2502 = vmatprep.subr.bf16.mxu1 %v3905_v8  ;;  %v167_v8 = vsub.s32 2, %v4521_v10 }
 0x142   :  { %v551_v15 = vpop.f32.mrb[0].mxu1  ;;  %v637_v41 = vpop.f32.mrb[0].mxu0 }
 0x143   :  { %v552_v16 = vadd.f32 %v551_v15, %v160_v13  ;;  %v553_v17 = vpop.f32.mrb[1].mxu1  ;;  %v638_v42 = vadd.f32 %v637_v41, %v176_v33  ;;  %v639_v43 = vpop.f32.mrb[1].mxu0  ;;  %v3932_v15 = vld [vmem:[#allocation4 + $0x2a4] ss:$16 sps:$4 sm:$0xff]  }
 0x144   :  { %v554_v18 = vadd.f32 %v553_v17, %v164_v14  ;;  %v555_v19 = vpop.f32.mrb[2].mxu1  ;;  %v640_v2 = vadd.f32 %v639_v43, %v180_v35  ;;  %v641_v45 = vpop.f32.mrb[2].mxu0  ;;  %v168_v17 = vrot.slane %v4529_v12, %v167_v8  ;;  %v3950_v43 = vld [vmem:[#allocation4 + $0x304] ss:$16 sps:$4 sm:$0xff]  }
 0x145   :  { %v689_v20 = vmul.f32 0.2, %v552_v16  ;;  %v556_v21 = vadd.f32 %v555_v19, %v160_v13  ;;  %v557_v22 = vpop.f32.mrb[3].mxu1  ;;  %v693_v47 = vmul.f32 0.2, %v638_v42  ;;  %v642_v48 = vadd.f32 %v641_v45, %v176_v33  ;;  %v643_v49 = vpop.f32.mrb[3].mxu0 }
 0x146   :  { %v690_v23 = vmul.f32 0.2, %v554_v18  ;;  %v558_v24 = vadd.f32 %v557_v22, %v164_v14  ;;  %v694_v52 = vmul.f32 0.2, %v640_v2  ;;  %v644_v53 = vadd.f32 %v643_v49, %v180_v35  ;;  %v3927_v13 = vld [vmem:[#allocation4 + $0x288] ss:$16 sps:$4 sm:$0xff]  }
 0x147   :  { %v697_v26 = vmul.f32 0.2, %v556_v21  ;;  %v705_v29 = vmax.f32 %v552_v16, %v689_v20  ;;  %v709_v54 = vmax.f32 %v638_v42, %v693_v47  ;;  %v701_v55 = vmul.f32 0.2, %v642_v48  ;;  %v3935_v16 = vld [vmem:[#allocation4 + $0x2ac] ss:$16 sps:$4 sm:$0xff]  }
 0x148   :  { %v698_v28 = vmul.f32 0.2, %v558_v24  ;;  %v706_v31 = vmax.f32 %v554_v18, %v690_v23  ;;  %v710_v56 = vmax.f32 %v640_v2, %v694_v52  ;;  %v702_v57 = vmul.f32 0.2, %v644_v53  ;;  %v3930_v18 = vld [vmem:[#allocation4 + $0x2a0] ss:$16 sps:$4 sm:$0xff]  }
 0x149   :  { %v713_v30 = vmax.f32 %v556_v21, %v697_v26  ;;  %v717_v60 = vmax.f32 %v642_v48, %v701_v55  ;;  %v171_v14 = vsub.s32 3, %v4521_v10  ;;  %v3933_v19 = vld [vmem:[#allocation4 + $0x2a8] ss:$16 sps:$4 sm:$0xff]   ;;  %v3938_v21 = vld [vmem:[#allocation4 + $0x2c4] ss:$16 sps:$4 sm:$0xff]  }
 0x14a   :  { %v714_v32 = vmax.f32 %v558_v24, %v698_v28  ;;  %v718_v63 = vmax.f32 %v644_v53, %v702_v57  ;;  %v3941_v22 = vld [vmem:[#allocation4 + $0x2cc] ss:$16 sps:$4 sm:$0xff]   ;;  %v3936_v24 = vld [vmem:[#allocation4 + $0x2c0] ss:$16 sps:$4 sm:$0xff]   ;;  %v3944_v28 = vld [vmem:[#allocation4 + $0x2e4] ss:$16 sps:$4 sm:$0xff]  }
 0x14b   :  { %v721_v34 = vpack.c.bf16 %v713_v30, %v705_v29  ;;  %v4542_v1 = vpack.c.bf16 %v717_v60, %v709_v54  ;;  %v172_v20 = vrot.slane %v4529_v12, %v171_v14  ;;  %v3948_v47 = vld [vmem:[#allocation4 + $0x300] ss:$16 sps:$4 sm:$0xff]   ;;  %v3951_v48 = vld [vmem:[#allocation4 + $0x308] ss:$16 sps:$4 sm:$0xff]   ;;  %v3962_v54 = vld [vmem:[#allocation4 + $0x344] ss:$16 sps:$4 sm:$0xff]  }
 0x14c   :  { %v722_v36 = vpack.c.bf16 %v714_v32, %v706_v31  ;;  %v4544_v3 = vpack.c.bf16 %v718_v63, %v710_v56  ;;  %v3947_v31 = vld [vmem:[#allocation4 + $0x2ec] ss:$16 sps:$4 sm:$0xff]   ;;  %v3954_v52 = vld [vmem:[#allocation4 + $0x320] ss:$16 sps:$4 sm:$0xff]   ;;  %v3957_v53 = vld [vmem:[#allocation4 + $0x328] ss:$16 sps:$4 sm:$0xff]  }
 0x14d   :  { %v3965_v55 = vld [vmem:[#allocation4 + $0x34c] ss:$16 sps:$4 sm:$0xff]   ;;  %v3960_v56 = vld [vmem:[#allocation4 + $0x340] ss:$16 sps:$4 sm:$0xff]   ;;  %v3963_v57 = vld [vmem:[#allocation4 + $0x348] ss:$16 sps:$4 sm:$0xff]  }
 0x14e   :  { %2319 = vmatprep.mubr.bf16.mxu0 %v722_v36  ;;  %2491 = vmatprep.mubr.bf16.mxu1 %v722_v36  ;;  %v3966_v60 = vld [vmem:[#allocation4 + $0x360] ss:$16 sps:$4 sm:$0xff]   ;;  %v3977_v63 = vld [vmem:[#allocation4 + $0x38c] ss:$16 sps:$4 sm:$0xff]  }
 0x14f   :  { %2320 = vmatmul.mubr.bf16.vlgmr.msra.gmra.mrb[4].mxu0 %v721_v34  ;;  %2492 = vmatmul.mubr.bf16.vlgmr.msra.gmra.mrb[12].mxu1 %v721_v34 }
 0x150   :  { %2331 = vmatpush1.bf16.msra.mxu0 %v3900_v37  ;;  %2503 = vmatpush1.bf16.msra.mxu1 %v3903_v38 }
 0x151   :  { %2332 = vmatprep.subr.bf16.mxu0 %v3908_v39  ;;  %2504 = vmatprep.subr.bf16.mxu1 %v3911_v40  ;;  %v3942_v39 = vld [vmem:[#allocation4 + $0x2e0] ss:$16 sps:$4 sm:$0xff]   ;;  %v3945_v40 = vld [vmem:[#allocation4 + $0x2e8] ss:$16 sps:$4 sm:$0xff]  }
 0x154   :  { %2333 = vmatpush1.bf16.msra.mxu0 %v3906_v44  ;;  %2505 = vmatpush1.bf16.msra.mxu1 %v3909_v46  ;;  %v3953_v44 = vld [vmem:[#allocation4 + $0x30c] ss:$16 sps:$4 sm:$0xff]  }
 0x155   :  { %2334 = vmatprep.subr.bf16.mxu0 %v3914_v50  ;;  %2506 = vmatprep.subr.bf16.mxu1 %v3917_v51  ;;  %v3956_v50 = vld [vmem:[#allocation4 + $0x324] ss:$16 sps:$4 sm:$0xff]   ;;  %v3959_v51 = vld [vmem:[#allocation4 + $0x32c] ss:$16 sps:$4 sm:$0xff]  }
 0x158   :  { %2335 = vmatpush1.bf16.msra.mxu0 %v3912_v58  ;;  %2507 = vmatpush1.bf16.msra.mxu1 %v3915_v59  ;;  %v3968_v58 = vld [vmem:[#allocation4 + $0x364] ss:$16 sps:$4 sm:$0xff]   ;;  %v3971_v59 = vld [vmem:[#allocation4 + $0x36c] ss:$16 sps:$4 sm:$0xff]  }
 0x159   :  { %2336 = vmatprep.subr.bf16.mxu0 %v3920_v61  ;;  %2508 = vmatprep.subr.bf16.mxu1 %v3923_v62  ;;  %v3969_v61 = vld [vmem:[#allocation4 + $0x368] ss:$16 sps:$4 sm:$0xff]   ;;  %v3974_v62 = vld [vmem:[#allocation4 + $0x384] ss:$16 sps:$4 sm:$0xff]  }
 0x15c   :  { %2337 = vmatpush1.bf16.msra.mxu0 %v3918_v4  ;;  %2509 = vmatpush1.bf16.msra.mxu1 %v3921_v5  ;;  %v3972_v4 = vld [vmem:[#allocation4 + $0x380] ss:$16 sps:$4 sm:$0xff]   ;;  %v3975_v5 = vld [vmem:[#allocation4 + $0x388] ss:$16 sps:$4 sm:$0xff]  }
 0x15d   :  { %2338 = vmatprep.subr.bf16.mxu0 %v3926_v6  ;;  %2510 = vmatprep.subr.bf16.mxu1 %v3929_v7  ;;  %v183_v6 = vsub.s32 6, %v4521_v10  ;;  %v187_v7 = vsub.s32 7, %v4521_v10 }
 0x160   :  { %2339 = vmatpush1.bf16.msra.mxu0 %v3924_v9  ;;  %2511 = vmatpush1.bf16.msra.mxu1 %v3927_v13  ;;  %v3980_v9 = vld [vmem:[#allocation4 + $0x3a4] ss:$16 sps:$4 sm:$0xff]   ;;  %v3983_v13 = vld [vmem:[#allocation4 + $0x3ac] ss:$16 sps:$4 sm:$0xff]  }
 0x161   :  { %2340 = vmatprep.subr.bf16.mxu0 %v3932_v15  ;;  %2512 = vmatprep.subr.bf16.mxu1 %v3935_v16  ;;  %v184_v15 = vrot.slane %v4529_v12, %v183_v6  ;;  %v3978_v16 = vld [vmem:[#allocation4 + $0x3a0] ss:$16 sps:$4 sm:$0xff]   ;;  %v4034_v6 = vld [vmem:[#allocation4 + $0x4c4] ss:$16 sps:$4 sm:$0xff]  }
 0x162   :  { %v594_v23 = vpop.f32.mrb[4].mxu1 }
 0x163   :  { %v595_v25 = vadd.f32 %v594_v23, %v168_v17  ;;  %v596_v26 = vpop.f32.mrb[5].mxu1 }
 0x164   :  { %2341 = vmatpush1.bf16.msra.mxu0 %v3930_v18  ;;  %2513 = vmatpush1.bf16.msra.mxu1 %v3933_v19  ;;  %v597_v29 = vadd.f32 %v596_v26, %v172_v20  ;;  %v598_v30 = vpop.f32.mrb[6].mxu1  ;;  %v188_v18 = vrot.slane %v4529_v12, %v187_v7  ;;  %v3986_v19 = vld [vmem:[#allocation4 + $0x3c4] ss:$16 sps:$4 sm:$0xff]   ;;  %v4037_v7 = vld [vmem:[#allocation4 + $0x4cc] ss:$16 sps:$4 sm:$0xff]  }
 0x165   :  { %2342 = vmatprep.subr.bf16.mxu0 %v3938_v21  ;;  %2514 = vmatprep.subr.bf16.mxu1 %v3941_v22  ;;  %v691_v32 = vmul.f32 0.2, %v595_v25  ;;  %v599_v33 = vadd.f32 %v598_v30, %v168_v17  ;;  %v600_v34 = vpop.f32.mrb[7].mxu1  ;;  %v3981_v17 = vld [vmem:[#allocation4 + $0x3a8] ss:$16 sps:$4 sm:$0xff]  }
 0x166   :  { %v692_v35 = vmul.f32 0.2, %v597_v29  ;;  %v601_v36 = vadd.f32 %v600_v34, %v172_v20  ;;  %v3989_v20 = vld [vmem:[#allocation4 + $0x3cc] ss:$16 sps:$4 sm:$0xff]   ;;  %v3984_v22 = vld [vmem:[#allocation4 + $0x3c0] ss:$16 sps:$4 sm:$0xff]  }
 0x167   :  { %v707_v37 = vmax.f32 %v595_v25, %v691_v32  ;;  %v699_v38 = vmul.f32 0.2, %v599_v33  ;;  %v3987_v25 = vld [vmem:[#allocation4 + $0x3c8] ss:$16 sps:$4 sm:$0xff]   ;;  %v3992_v26 = vld [vmem:[#allocation4 + $0x3e4] ss:$16 sps:$4 sm:$0xff]  }
 0x168   :  { %2343 = vmatpush1.bf16.msra.mxu0 %v3936_v24  ;;  %2515 = vmatpush1.bf16.msra.mxu1 %v3939_v27  ;;  %v708_v41 = vmax.f32 %v597_v29, %v692_v35  ;;  %v700_v42 = vmul.f32 0.2, %v601_v36  ;;  %v3995_v29 = vld [vmem:[#allocation4 + $0x3ec] ss:$16 sps:$4 sm:$0xff]  }
 0x169   :  { %2344 = vmatprep.subr.bf16.mxu0 %v3944_v28  ;;  %2516 = vmatprep.subr.bf16.mxu1 %v3947_v31  ;;  %v715_v2 = vmax.f32 %v599_v33, %v699_v38 }
 0x16a   :  { %v716_v45 = vmax.f32 %v601_v36, %v700_v42  ;;  %v3990_v36 = vld [vmem:[#allocation4 + $0x3e0] ss:$16 sps:$4 sm:$0xff]  }
 0x16b   :  { %v4554_v46 = vpack.c.bf16 %v715_v2, %v707_v37  ;;  %v3993_v37 = vld [vmem:[#allocation4 + $0x3e8] ss:$16 sps:$4 sm:$0xff]   ;;  %v3996_v2 = vld [vmem:[#allocation4 + $0x400] ss:$16 sps:$4 sm:$0xff]  }
 0x16c   :  { %2345 = vmatpush1.bf16.msra.mxu0 %v3942_v39  ;;  %2517 = vmatpush1.bf16.msra.mxu1 %v3945_v40  ;;  %v724_v49 = vpack.c.bf16 %v716_v45, %v708_v41  ;;  %v3998_v40 = vld [vmem:[#allocation4 + $0x404] ss:$16 sps:$4 sm:$0xff]   ;;  %v4001_v41 = vld [vmem:[#allocation4 + $0x40c] ss:$16 sps:$4 sm:$0xff]   ;;  %v3999_v45 = vld [vmem:[#allocation4 + $0x408] ss:$16 sps:$4 sm:$0xff]  }
 0x16d   :  { %2346 = vmatprep.subr.bf16.mxu0 %v3950_v43  ;;  %2518 = vmatprep.subr.bf16.mxu1 %v3953_v44 }
 0x16e   :  { %2362 = vmatprep.mubr.bf16.mxu0 %v724_v49  ;;  %2534 = vmatprep.mubr.bf16.mxu1 %v724_v49  ;;  %v4007_v49 = vld [vmem:[#allocation4 + $0x42c] ss:$16 sps:$4 sm:$0xff]  }
 0x170   :  { %2347 = vmatpush1.bf16.msra.mxu0 %v3948_v47  ;;  %2519 = vmatpush1.bf16.msra.mxu1 %v3951_v48  ;;  %v4004_v48 = vld [vmem:[#allocation4 + $0x424] ss:$16 sps:$4 sm:$0xff]  }
 0x171   :  { %2348 = vmatprep.subr.bf16.mxu0 %v3956_v50  ;;  %2520 = vmatprep.subr.bf16.mxu1 %v3959_v51  ;;  %v4002_v50 = vld [vmem:[#allocation4 + $0x420] ss:$16 sps:$4 sm:$0xff]   ;;  %v4005_v51 = vld [vmem:[#allocation4 + $0x428] ss:$16 sps:$4 sm:$0xff]  }
 0x174   :  { %2349 = vmatpush1.bf16.msra.mxu0 %v3954_v52  ;;  %2521 = vmatpush1.bf16.msra.mxu1 %v3957_v53  ;;  %v4010_v52 = vld [vmem:[#allocation4 + $0x444] ss:$16 sps:$4 sm:$0xff]   ;;  %v4013_v53 = vld [vmem:[#allocation4 + $0x44c] ss:$16 sps:$4 sm:$0xff]  }
 0x175   :  { %2350 = vmatprep.subr.bf16.mxu0 %v3962_v54  ;;  %2522 = vmatprep.subr.bf16.mxu1 %v3965_v55  ;;  %v4008_v54 = vld [vmem:[#allocation4 + $0x440] ss:$16 sps:$4 sm:$0xff]   ;;  %v4011_v55 = vld [vmem:[#allocation4 + $0x448] ss:$16 sps:$4 sm:$0xff]  }
 0x178   :  { %2351 = vmatpush1.bf16.msra.mxu0 %v3960_v56  ;;  %2523 = vmatpush1.bf16.msra.mxu1 %v3963_v57  ;;  %v4016_v56 = vld [vmem:[#allocation4 + $0x464] ss:$16 sps:$4 sm:$0xff]   ;;  %v4014_v57 = vld [vmem:[#allocation4 + $0x460] ss:$16 sps:$4 sm:$0xff]  }
 0x179   :  { %2352 = vmatprep.subr.bf16.mxu0 %v3968_v58  ;;  %2524 = vmatprep.subr.bf16.mxu1 %v3971_v59  ;;  %v4017_v58 = vld [vmem:[#allocation4 + $0x468] ss:$16 sps:$4 sm:$0xff]   ;;  %v4022_v59 = vld [vmem:[#allocation4 + $0x484] ss:$16 sps:$4 sm:$0xff]  }
 0x17c   :  { %2353 = vmatpush1.bf16.msra.mxu0 %v3966_v60  ;;  %2525 = vmatpush1.bf16.msra.mxu1 %v3969_v61  ;;  %v4025_v60 = vld [vmem:[#allocation4 + $0x48c] ss:$16 sps:$4 sm:$0xff]   ;;  %v4020_v61 = vld [vmem:[#allocation4 + $0x480] ss:$16 sps:$4 sm:$0xff]  }
 0x17d   :  { %2354 = vmatprep.subr.bf16.mxu0 %v3974_v62  ;;  %2526 = vmatprep.subr.bf16.mxu1 %v3977_v63  ;;  %v4028_v62 = vld [vmem:[#allocation4 + $0x4a4] ss:$16 sps:$4 sm:$0xff]   ;;  %v4031_v63 = vld [vmem:[#allocation4 + $0x4ac] ss:$16 sps:$4 sm:$0xff]  }
 0x180   :  { %2355 = vmatpush1.bf16.msra.mxu0 %v3972_v4  ;;  %2527 = vmatpush1.bf16.msra.mxu1 %v3975_v5  ;;  %v4026_v4 = vld [vmem:[#allocation4 + $0x4a0] ss:$16 sps:$4 sm:$0xff]   ;;  %v4029_v5 = vld [vmem:[#allocation4 + $0x4a8] ss:$16 sps:$4 sm:$0xff]  }
 0x181   :  { %2356 = vmatprep.subr.bf16.mxu0 %v3980_v9  ;;  %2528 = vmatprep.subr.bf16.mxu1 %v3983_v13  ;;  %v4032_v9 = vld [vmem:[#allocation4 + $0x4c0] ss:$16 sps:$4 sm:$0xff]   ;;  %v4035_v13 = vld [vmem:[#allocation4 + $0x4c8] ss:$16 sps:$4 sm:$0xff]  }
 0x182   :  { %v680_v21 = vpop.f32.mrb[8].mxu1 }
 0x183   :  { %v681_v23 = vadd.f32 %v680_v21, %v184_v15  ;;  %v682_v24 = vpop.f32.mrb[9].mxu1  ;;  %v4044_v21 = vld [vmem:[#allocation4 + $0x500] ss:$16 sps:$4 sm:$0xff]  }
 0x184   :  { %2357 = vmatpush1.bf16.msra.mxu0 %v3978_v16  ;;  %2529 = vmatpush1.bf16.msra.mxu1 %v3981_v17  ;;  %v683_v27 = vadd.f32 %v682_v24, %v188_v18  ;;  %v684_v28 = vpop.f32.mrb[10].mxu1  ;;  %v4043_v16 = vld [vmem:[#allocation4 + $0x4ec] ss:$16 sps:$4 sm:$0xff]   ;;  %v4038_v17 = vld [vmem:[#allocation4 + $0x4e0] ss:$16 sps:$4 sm:$0xff]  }
 0x185   :  { %2358 = vmatprep.subr.bf16.mxu0 %v3986_v19  ;;  %2530 = vmatprep.subr.bf16.mxu1 %v3989_v20  ;;  %v695_v30 = vmul.f32 0.2, %v681_v23  ;;  %v685_v31 = vadd.f32 %v684_v28, %v184_v15  ;;  %v686_v12 = vpop.f32.mrb[11].mxu1  ;;  %v4040_v15 = vld [vmem:[#allocation4 + $0x4e4] ss:$16 sps:$4 sm:$0xff]  }
 0x186   :  { %v696_v32 = vmul.f32 0.2, %v683_v27  ;;  %v687_v33 = vadd.f32 %v686_v12, %v188_v18  ;;  %v4041_v18 = vld [vmem:[#allocation4 + $0x4e8] ss:$16 sps:$4 sm:$0xff]   ;;  %v4046_v19 = vld [vmem:[#allocation4 + $0x504] ss:$16 sps:$4 sm:$0xff]  }
 0x187   :  { %v711_v34 = vmax.f32 %v681_v23, %v695_v30  ;;  %v703_v35 = vmul.f32 0.2, %v685_v31  ;;  %v4049_v20 = vld [vmem:[#allocation4 + $0x50c] ss:$16 sps:$4 sm:$0xff]   ;;  %v4052_v23 = vld [vmem:[#allocation4 + $0x524] ss:$16 sps:$4 sm:$0xff]  }
 0x188   :  { %2359 = vmatpush1.bf16.msra.mxu0 %v3984_v22  ;;  %2531 = vmatpush1.bf16.msra.mxu1 %v3987_v25  ;;  %v712_v38 = vmax.f32 %v683_v27, %v696_v32  ;;  %v704_v39 = vmul.f32 0.2, %v687_v33  ;;  %v4047_v22 = vld [vmem:[#allocation4 + $0x508] ss:$16 sps:$4 sm:$0xff]   ;;  %v4055_v24 = vld [vmem:[#allocation4 + $0x52c] ss:$16 sps:$4 sm:$0xff]  }
 0x189   :  { %2360 = vmatprep.subr.bf16.mxu0 %v3992_v26  ;;  %2532 = vmatprep.subr.bf16.mxu1 %v3995_v29  ;;  %v719_v42 = vmax.f32 %v685_v31, %v703_v35  ;;  %v4050_v25 = vld [vmem:[#allocation4 + $0x520] ss:$16 sps:$4 sm:$0xff]   ;;  %v4053_v26 = vld [vmem:[#allocation4 + $0x528] ss:$16 sps:$4 sm:$0xff]   ;;  %v4058_v27 = vld [vmem:[#allocation4 + $0x544] ss:$16 sps:$4 sm:$0xff]  }
 0x18a   :  { %v720_v43 = vmax.f32 %v687_v33, %v704_v39  ;;  %v4061_v28 = vld [vmem:[#allocation4 + $0x54c] ss:$16 sps:$4 sm:$0xff]   ;;  %v4056_v29 = vld [vmem:[#allocation4 + $0x540] ss:$16 sps:$4 sm:$0xff]   ;;  %v4059_v30 = vld [vmem:[#allocation4 + $0x548] ss:$16 sps:$4 sm:$0xff]  }
 0x18b   :  { %v4560_v44 = vpack.c.bf16 %v719_v42, %v711_v34  ;;  %v4064_v31 = vld [vmem:[#allocation4 + $0x564] ss:$16 sps:$4 sm:$0xff]   ;;  %v4067_v12 = vld [vmem:[#allocation4 + $0x56c] ss:$16 sps:$4 sm:$0xff]   ;;  %v4062_v32 = vld [vmem:[#allocation4 + $0x560] ss:$16 sps:$4 sm:$0xff]  }
 0x18c   :  { %2361 = vmatpush1.bf16.msra.mxu0 %v3990_v36  ;;  %2533 = vmatpush1.bf16.msra.mxu1 %v3993_v37  ;;  %v4562_v47 = vpack.c.bf16 %v720_v43, %v712_v38  ;;  %v4065_v33 = vld [vmem:[#allocation4 + $0x568] ss:$16 sps:$4 sm:$0xff]   ;;  %v4070_v34 = vld [vmem:[#allocation4 + $0x584] ss:$16 sps:$4 sm:$0xff]   ;;  %v4073_v35 = vld [vmem:[#allocation4 + $0x58c] ss:$16 sps:$4 sm:$0xff]  }
 0x18d   :  { %2373 = vmatprep.subr.bf16.mxu0 %v3998_v40  ;;  %2545 = vmatprep.subr.bf16.mxu1 %v4001_v41  ;;  %v4068_v36 = vld [vmem:[#allocation4 + $0x580] ss:$16 sps:$4 sm:$0xff]   ;;  %v4071_v37 = vld [vmem:[#allocation4 + $0x588] ss:$16 sps:$4 sm:$0xff]   ;;  %v4076_v38 = vld [vmem:[#allocation4 + $0x5a4] ss:$16 sps:$4 sm:$0xff]  }
 0x18e   :  { %v4079_v39 = vld [vmem:[#allocation4 + $0x5ac] ss:$16 sps:$4 sm:$0xff]   ;;  %v4074_v40 = vld [vmem:[#allocation4 + $0x5a0] ss:$16 sps:$4 sm:$0xff]   ;;  %v4077_v41 = vld [vmem:[#allocation4 + $0x5a8] ss:$16 sps:$4 sm:$0xff]  }
 0x18f   :  { %2363 = vmatmul.mubr.bf16.vlgmr.msra.gmra.mrb[4].mxu0 %v4554_v46  ;;  %2535 = vmatmul.mubr.bf16.vlgmr.msra.gmra.mrb[12].mxu1 %v4554_v46  ;;  %v4019_v46 = vld [vmem:[#allocation4 + $0x46c] ss:$16 sps:$4 sm:$0xff]   ;;  %v4082_v42 = vld [vmem:[#allocation4 + $0x5c4] ss:$16 sps:$4 sm:$0xff]  }
 0x190   :  { %2374 = vmatpush1.bf16.msra.mxu0 %v3996_v2  ;;  %2546 = vmatpush1.bf16.msra.mxu1 %v3999_v45  ;;  %v4085_v43 = vld [vmem:[#allocation4 + $0x5cc] ss:$16 sps:$4 sm:$0xff]   ;;  %v4080_v2 = vld [vmem:[#allocation4 + $0x5c0] ss:$16 sps:$4 sm:$0xff]   ;;  %v4083_v45 = vld [vmem:[#allocation4 + $0x5c8] ss:$16 sps:$4 sm:$0xff]  }
 0x191   :  { %2375 = vmatprep.subr.bf16.mxu0 %v4004_v48  ;;  %2547 = vmatprep.subr.bf16.mxu1 %v4007_v49  ;;  %v4088_v48 = vld [vmem:[#allocation4 + $0x5e4] ss:$16 sps:$4 sm:$0xff]   ;;  %v4091_v49 = vld [vmem:[#allocation4 + $0x5ec] ss:$16 sps:$4 sm:$0xff]  }
 0x192   :  { %2405 = vmatprep.mubr.bf16.mxu0 %v4544_v3  ;;  %2577 = vmatprep.mubr.bf16.mxu1 %v4544_v3  ;;  %v4023_v3 = vld [vmem:[#allocation4 + $0x488] ss:$16 sps:$4 sm:$0xff]  }
 0x194   :  { %2376 = vmatpush1.bf16.msra.mxu0 %v4002_v50  ;;  %2548 = vmatpush1.bf16.msra.mxu1 %v4005_v51  ;;  %v4086_v50 = vld [vmem:[#allocation4 + $0x5e0] ss:$16 sps:$4 sm:$0xff]   ;;  %v4089_v51 = vld [vmem:[#allocation4 + $0x5e8] ss:$16 sps:$4 sm:$0xff]  }
 0x195   :  { %2377 = vmatprep.subr.bf16.mxu0 %v4010_v52  ;;  %2549 = vmatprep.subr.bf16.mxu1 %v4013_v53  ;;  %v4094_v52 = vld [vmem:[#allocation4 + $0x604] ss:$16 sps:$4 sm:$0xff]   ;;  %v4097_v53 = vld [vmem:[#allocation4 + $0x60c] ss:$16 sps:$4 sm:$0xff]  }
 0x198   :  { %2378 = vmatpush1.bf16.msra.mxu0 %v4008_v54  ;;  %2550 = vmatpush1.bf16.msra.mxu1 %v4011_v55  ;;  %v4092_v54 = vld [vmem:[#allocation4 + $0x600] ss:$16 sps:$4 sm:$0xff]   ;;  %v4095_v55 = vld [vmem:[#allocation4 + $0x608] ss:$16 sps:$4 sm:$0xff]  }
 0x199   :  { %2379 = vmatprep.subr.bf16.mxu0 %v4016_v56  ;;  %2551 = vmatprep.subr.bf16.mxu1 %v4019_v46  ;;  %v4100_v56 = vld [vmem:[#allocation4 + $0x624] ss:$16 sps:$4 sm:$0xff]   ;;  %v4103_v46 = vld [vmem:[#allocation4 + $0x62c] ss:$16 sps:$4 sm:$0xff]  }
 0x19c   :  { %2380 = vmatpush1.bf16.msra.mxu0 %v4014_v57  ;;  %2552 = vmatpush1.bf16.msra.mxu1 %v4017_v58  ;;  %v4098_v57 = vld [vmem:[#allocation4 + $0x620] ss:$16 sps:$4 sm:$0xff]   ;;  %v4101_v58 = vld [vmem:[#allocation4 + $0x628] ss:$16 sps:$4 sm:$0xff]  }
 0x19d   :  { %2381 = vmatprep.subr.bf16.mxu0 %v4022_v59  ;;  %2553 = vmatprep.subr.bf16.mxu1 %v4025_v60  ;;  %v4106_v59 = vld [vmem:[#allocation4 + $0x644] ss:$16 sps:$4 sm:$0xff]   ;;  %v4109_v60 = vld [vmem:[#allocation4 + $0x64c] ss:$16 sps:$4 sm:$0xff]  }
 0x1a0   :  { %2382 = vmatpush1.bf16.msra.mxu0 %v4020_v61  ;;  %2554 = vmatpush1.bf16.msra.mxu1 %v4023_v3  ;;  %v4104_v61 = vld [vmem:[#allocation4 + $0x640] ss:$16 sps:$4 sm:$0xff]   ;;  %v4107_v3 = vld [vmem:[#allocation4 + $0x648] ss:$16 sps:$4 sm:$0xff]  }
 0x1a1   :  { %2383 = vmatprep.subr.bf16.mxu0 %v4028_v62  ;;  %2555 = vmatprep.subr.bf16.mxu1 %v4031_v63  ;;  %v4112_v62 = vld [vmem:[#allocation4 + $0x664] ss:$16 sps:$4 sm:$0xff]   ;;  %v4110_v63 = vld [vmem:[#allocation4 + $0x660] ss:$16 sps:$4 sm:$0xff]  }
 0x1a4   :  { %2384 = vmatpush1.bf16.msra.mxu0 %v4026_v4  ;;  %2556 = vmatpush1.bf16.msra.mxu1 %v4029_v5  ;;  %v4113_v4 = vld [vmem:[#allocation4 + $0x668] ss:$16 sps:$4 sm:$0xff]   ;;  %v4118_v5 = vld [vmem:[#allocation4 + $0x684] ss:$16 sps:$4 sm:$0xff]  }
 0x1a5   :  { %2385 = vmatprep.subr.bf16.mxu0 %v4034_v6  ;;  %2557 = vmatprep.subr.bf16.mxu1 %v4037_v7  ;;  %v4121_v6 = vld [vmem:[#allocation4 + $0x68c] ss:$16 sps:$4 sm:$0xff]   ;;  %v4116_v7 = vld [vmem:[#allocation4 + $0x680] ss:$16 sps:$4 sm:$0xff]  }
 0x1a8   :  { %2386 = vmatpush1.bf16.msra.mxu0 %v4032_v9  ;;  %2558 = vmatpush1.bf16.msra.mxu1 %v4035_v13  ;;  %v4124_v9 = vld [vmem:[#allocation4 + $0x6a4] ss:$16 sps:$4 sm:$0xff]   ;;  %v4127_v13 = vld [vmem:[#allocation4 + $0x6ac] ss:$16 sps:$4 sm:$0xff]  }
 0x1a9   :  { %2387 = vmatprep.subr.bf16.mxu0 %v4040_v15  ;;  %2559 = vmatprep.subr.bf16.mxu1 %v4043_v16  ;;  %v4122_v15 = vld [vmem:[#allocation4 + $0x6a0] ss:$16 sps:$4 sm:$0xff]   ;;  %v4125_v16 = vld [vmem:[#allocation4 + $0x6a8] ss:$16 sps:$4 sm:$0xff]  }
 0x1ac   :  { %2388 = vmatpush1.bf16.msra.mxu0 %v4038_v17  ;;  %2560 = vmatpush1.bf16.msra.mxu1 %v4041_v18  ;;  %v4130_v17 = vld [vmem:[#allocation4 + $0x6c4] ss:$16 sps:$4 sm:$0xff]   ;;  %v4133_v18 = vld [vmem:[#allocation4 + $0x6cc] ss:$16 sps:$4 sm:$0xff]  }
 0x1ad   :  { %2389 = vmatprep.subr.bf16.mxu0 %v4046_v19  ;;  %2561 = vmatprep.subr.bf16.mxu1 %v4049_v20  ;;  %v4128_v19 = vld [vmem:[#allocation4 + $0x6c0] ss:$16 sps:$4 sm:$0xff]   ;;  %v4131_v20 = vld [vmem:[#allocation4 + $0x6c8] ss:$16 sps:$4 sm:$0xff]  }
 0x1b0   :  { %2390 = vmatpush1.bf16.msra.mxu0 %v4044_v21  ;;  %2562 = vmatpush1.bf16.msra.mxu1 %v4047_v22  ;;  %v4136_v21 = vld [vmem:[#allocation4 + $0x6e4] ss:$16 sps:$4 sm:$0xff]   ;;  %v4139_v22 = vld [vmem:[#allocation4 + $0x6ec] ss:$16 sps:$4 sm:$0xff]  }
 0x1b1   :  { %2391 = vmatprep.subr.bf16.mxu0 %v4052_v23  ;;  %2563 = vmatprep.subr.bf16.mxu1 %v4055_v24  ;;  %v4134_v23 = vld [vmem:[#allocation4 + $0x6e0] ss:$16 sps:$4 sm:$0xff]   ;;  %v4137_v24 = vld [vmem:[#allocation4 + $0x6e8] ss:$16 sps:$4 sm:$0xff]  }
 0x1b4   :  { %2392 = vmatpush1.bf16.msra.mxu0 %v4050_v25  ;;  %2564 = vmatpush1.bf16.msra.mxu1 %v4053_v26  ;;  %v4142_v25 = vld [vmem:[#allocation4 + $0x704] ss:$16 sps:$4 sm:$0xff]   ;;  %v4145_v26 = vld [vmem:[#allocation4 + $0x70c] ss:$16 sps:$4 sm:$0xff]  }
 0x1b5   :  { %2393 = vmatprep.subr.bf16.mxu0 %v4058_v27  ;;  %2565 = vmatprep.subr.bf16.mxu1 %v4061_v28  ;;  %v4140_v27 = vld [vmem:[#allocation4 + $0x700] ss:$16 sps:$4 sm:$0xff]   ;;  %v4143_v28 = vld [vmem:[#allocation4 + $0x708] ss:$16 sps:$4 sm:$0xff]  }
 0x1b8   :  { %2394 = vmatpush1.bf16.msra.mxu0 %v4056_v29  ;;  %2566 = vmatpush1.bf16.msra.mxu1 %v4059_v30  ;;  %v4148_v29 = vld [vmem:[#allocation4 + $0x724] ss:$16 sps:$4 sm:$0xff]   ;;  %v4151_v30 = vld [vmem:[#allocation4 + $0x72c] ss:$16 sps:$4 sm:$0xff]  }
 0x1b9   :  { %2395 = vmatprep.subr.bf16.mxu0 %v4064_v31  ;;  %2567 = vmatprep.subr.bf16.mxu1 %v4067_v12  ;;  %v4146_v31 = vld [vmem:[#allocation4 + $0x720] ss:$16 sps:$4 sm:$0xff]   ;;  %v4149_v12 = vld [vmem:[#allocation4 + $0x728] ss:$16 sps:$4 sm:$0xff]  }
 0x1bc   :  { %2396 = vmatpush1.bf16.msra.mxu0 %v4062_v32  ;;  %2568 = vmatpush1.bf16.msra.mxu1 %v4065_v33  ;;  %v4154_v32 = vld [vmem:[#allocation4 + $0x744] ss:$16 sps:$4 sm:$0xff]   ;;  %v4157_v33 = vld [vmem:[#allocation4 + $0x74c] ss:$16 sps:$4 sm:$0xff]  }
 0x1bd   :  { %2397 = vmatprep.subr.bf16.mxu0 %v4070_v34  ;;  %2569 = vmatprep.subr.bf16.mxu1 %v4073_v35  ;;  %v4152_v34 = vld [vmem:[#allocation4 + $0x740] ss:$16 sps:$4 sm:$0xff]   ;;  %v4155_v35 = vld [vmem:[#allocation4 + $0x748] ss:$16 sps:$4 sm:$0xff]  }
 0x1c0   :  { %2398 = vmatpush1.bf16.msra.mxu0 %v4068_v36  ;;  %2570 = vmatpush1.bf16.msra.mxu1 %v4071_v37  ;;  %v4160_v36 = vld [vmem:[#allocation4 + $0x764] ss:$16 sps:$4 sm:$0xff]   ;;  %v4163_v37 = vld [vmem:[#allocation4 + $0x76c] ss:$16 sps:$4 sm:$0xff]  }
 0x1c1   :  { %2399 = vmatprep.subr.bf16.mxu0 %v4076_v38  ;;  %2571 = vmatprep.subr.bf16.mxu1 %v4079_v39  ;;  %v4158_v38 = vld [vmem:[#allocation4 + $0x760] ss:$16 sps:$4 sm:$0xff]   ;;  %v4161_v39 = vld [vmem:[#allocation4 + $0x768] ss:$16 sps:$4 sm:$0xff]  }
 0x1c4   :  { %2400 = vmatpush1.bf16.msra.mxu0 %v4074_v40  ;;  %2572 = vmatpush1.bf16.msra.mxu1 %v4077_v41  ;;  %v4166_v40 = vld [vmem:[#allocation4 + $0x784] ss:$16 sps:$4 sm:$0xff]   ;;  %v4169_v41 = vld [vmem:[#allocation4 + $0x78c] ss:$16 sps:$4 sm:$0xff]  }
 0x1c5   :  { %2401 = vmatprep.subr.bf16.mxu0 %v4082_v42  ;;  %2573 = vmatprep.subr.bf16.mxu1 %v4085_v43  ;;  %v4164_v42 = vld [vmem:[#allocation4 + $0x780] ss:$16 sps:$4 sm:$0xff]   ;;  %v4167_v43 = vld [vmem:[#allocation4 + $0x788] ss:$16 sps:$4 sm:$0xff]  }
 0x1c8   :  { %2402 = vmatpush1.bf16.msra.mxu0 %v4080_v2  ;;  %2574 = vmatpush1.bf16.msra.mxu1 %v4083_v45  ;;  %v4172_v2 = vld [vmem:[#allocation4 + $0x7a4] ss:$16 sps:$4 sm:$0xff]   ;;  %v4175_v45 = vld [vmem:[#allocation4 + $0x7ac] ss:$16 sps:$4 sm:$0xff]  }
 0x1c9   :  { %2403 = vmatprep.subr.bf16.mxu0 %v4088_v48  ;;  %2575 = vmatprep.subr.bf16.mxu1 %v4091_v49  ;;  %v4170_v48 = vld [vmem:[#allocation4 + $0x7a0] ss:$16 sps:$4 sm:$0xff]   ;;  %v4173_v49 = vld [vmem:[#allocation4 + $0x7a8] ss:$16 sps:$4 sm:$0xff]  }
 0x1cc   :  { %2404 = vmatpush1.bf16.msra.mxu0 %v4086_v50  ;;  %2576 = vmatpush1.bf16.msra.mxu1 %v4089_v51  ;;  %v4178_v50 = vld [vmem:[#allocation4 + $0x7c4] ss:$16 sps:$4 sm:$0xff]   ;;  %v4181_v51 = vld [vmem:[#allocation4 + $0x7cc] ss:$16 sps:$4 sm:$0xff]  }
 0x1cd   :  { %2416 = vmatprep.subr.bf16.mxu0 %v4094_v52  ;;  %2588 = vmatprep.subr.bf16.mxu1 %v4097_v53  ;;  %v4176_v52 = vld [vmem:[#allocation4 + $0x7c0] ss:$16 sps:$4 sm:$0xff]   ;;  %v4179_v53 = vld [vmem:[#allocation4 + $0x7c8] ss:$16 sps:$4 sm:$0xff]  }
 0x1cf   :  { %2406 = vmatmul.mubr.bf16.vlgmr.msra.gmra.mrb[4].mxu0 %v4542_v1  ;;  %2578 = vmatmul.mubr.bf16.vlgmr.msra.gmra.mrb[12].mxu1 %v4542_v1  ;;  %v4115_v1 = vld [vmem:[#allocation4 + $0x66c] ss:$16 sps:$4 sm:$0xff]  }
 0x1d0   :  { %2417 = vmatpush1.bf16.msra.mxu0 %v4092_v54  ;;  %2589 = vmatpush1.bf16.msra.mxu1 %v4095_v55  ;;  %v4184_v54 = vld [vmem:[#allocation4 + $0x7e4] ss:$16 sps:$4 sm:$0xff]   ;;  %v4187_v55 = vld [vmem:[#allocation4 + $0x7ec] ss:$16 sps:$4 sm:$0xff]  }
 0x1d1   :  { %2418 = vmatprep.subr.bf16.mxu0 %v4100_v56  ;;  %2590 = vmatprep.subr.bf16.mxu1 %v4103_v46  ;;  %v4182_v56 = vld [vmem:[#allocation4 + $0x7e0] ss:$16 sps:$4 sm:$0xff]   ;;  %v4185_v46 = vld [vmem:[#allocation4 + $0x7e8] ss:$16 sps:$4 sm:$0xff]  }
 0x1d2   :  { %2448 = vmatprep.mubr.bf16.mxu0 %v4562_v47  ;;  %2620 = vmatprep.mubr.bf16.mxu1 %v4562_v47  ;;  %v4119_v47 = vld [vmem:[#allocation4 + $0x688] ss:$16 sps:$4 sm:$0xff]  }
 0x1d4   :  { %2419 = vmatpush1.bf16.msra.mxu0 %v4098_v57  ;;  %2591 = vmatpush1.bf16.msra.mxu1 %v4101_v58  ;;  %v4190_v57 = vld [vmem:[#allocation6 + $0x4] ss:$8 sps:$4 sm:$0xff]   ;;  %v4188_v58 = vld [vmem:[#allocation6] ss:$8 sps:$4 sm:$0xff]  }
 0x1d5   :  { %2420 = vmatprep.subr.bf16.mxu0 %v4106_v59  ;;  %2592 = vmatprep.subr.bf16.mxu1 %v4109_v60  ;;  %v4193_v59 = vld [vmem:[#allocation6 + $0x14] ss:$8 sps:$4 sm:$0xff]   ;;  %v4191_v60 = vld [vmem:[#allocation6 + $0x10] ss:$8 sps:$4 sm:$0xff]  }
 0x1d8   :  { %2421 = vmatpush1.bf16.msra.mxu0 %v4104_v61  ;;  %2593 = vmatpush1.bf16.msra.mxu1 %v4107_v3  ;;  %v4196_v61 = vld [vmem:[#allocation6 + $0x24] ss:$8 sps:$4 sm:$0xff]   ;;  %v4194_v3 = vld [vmem:[#allocation6 + $0x20] ss:$8 sps:$4 sm:$0xff]  }
 0x1d9   :  { %2422 = vmatprep.subr.bf16.mxu0 %v4112_v62  ;;  %2594 = vmatprep.subr.bf16.mxu1 %v4115_v1  ;;  %v4199_v62 = vld [vmem:[#allocation6 + $0x34] ss:$8 sps:$4 sm:$0xff]   ;;  %v4197_v1 = vld [vmem:[#allocation6 + $0x30] ss:$8 sps:$4 sm:$0xff]  }
 0x1dc   :  { %2423 = vmatpush1.bf16.msra.mxu0 %v4110_v63  ;;  %2595 = vmatpush1.bf16.msra.mxu1 %v4113_v4  ;;  %v4202_v63 = vld [vmem:[#allocation6 + $0x44] ss:$8 sps:$4 sm:$0xff]   ;;  %v4200_v4 = vld [vmem:[#allocation6 + $0x40] ss:$8 sps:$4 sm:$0xff]  }
 0x1dd   :  { %2424 = vmatprep.subr.bf16.mxu0 %v4118_v5  ;;  %2596 = vmatprep.subr.bf16.mxu1 %v4121_v6  ;;  %v4205_v5 = vld [vmem:[#allocation6 + $0x54] ss:$8 sps:$4 sm:$0xff]   ;;  %v4203_v6 = vld [vmem:[#allocation6 + $0x50] ss:$8 sps:$4 sm:$0xff]  }
 0x1e0   :  { %2425 = vmatpush1.bf16.msra.mxu0 %v4116_v7  ;;  %2597 = vmatpush1.bf16.msra.mxu1 %v4119_v47  ;;  %v4206_v7 = vld [vmem:[#allocation6 + $0x60] ss:$8 sps:$4 sm:$0xff]   ;;  %v4211_v47 = vld [vmem:[#allocation6 + $0x74] ss:$8 sps:$4 sm:$0xff]  }
 0x1e1   :  { %2426 = vmatprep.subr.bf16.mxu0 %v4124_v9  ;;  %2598 = vmatprep.subr.bf16.mxu1 %v4127_v13  ;;  %v4209_v9 = vld [vmem:[#allocation6 + $0x70] ss:$8 sps:$4 sm:$0xff]   ;;  %v4214_v13 = vld [vmem:[#allocation6 + $0x84] ss:$8 sps:$4 sm:$0xff]  }
 0x1e4   :  { %2427 = vmatpush1.bf16.msra.mxu0 %v4122_v15  ;;  %2599 = vmatpush1.bf16.msra.mxu1 %v4125_v16  ;;  %v4212_v15 = vld [vmem:[#allocation6 + $0x80] ss:$8 sps:$4 sm:$0xff]   ;;  %v4217_v16 = vld [vmem:[#allocation6 + $0x94] ss:$8 sps:$4 sm:$0xff]  }
 0x1e5   :  { %2428 = vmatprep.subr.bf16.mxu0 %v4130_v17  ;;  %2600 = vmatprep.subr.bf16.mxu1 %v4133_v18  ;;  %v4215_v17 = vld [vmem:[#allocation6 + $0x90] ss:$8 sps:$4 sm:$0xff]   ;;  %v4220_v18 = vld [vmem:[#allocation6 + $0xa4] ss:$8 sps:$4 sm:$0xff]  }
 0x1e8   :  { %2429 = vmatpush1.bf16.msra.mxu0 %v4128_v19  ;;  %2601 = vmatpush1.bf16.msra.mxu1 %v4131_v20  ;;  %v4218_v19 = vld [vmem:[#allocation6 + $0xa0] ss:$8 sps:$4 sm:$0xff]   ;;  %v4223_v20 = vld [vmem:[#allocation6 + $0xb4] ss:$8 sps:$4 sm:$0xff]  }
 0x1e9   :  { %2430 = vmatprep.subr.bf16.mxu0 %v4136_v21  ;;  %2602 = vmatprep.subr.bf16.mxu1 %v4139_v22  ;;  %v4221_v21 = vld [vmem:[#allocation6 + $0xb0] ss:$8 sps:$4 sm:$0xff]   ;;  %v4226_v22 = vld [vmem:[#allocation6 + $0xc4] ss:$8 sps:$4 sm:$0xff]  }
 0x1ec   :  { %2431 = vmatpush1.bf16.msra.mxu0 %v4134_v23  ;;  %2603 = vmatpush1.bf16.msra.mxu1 %v4137_v24  ;;  %v4224_v23 = vld [vmem:[#allocation6 + $0xc0] ss:$8 sps:$4 sm:$0xff]   ;;  %v4229_v24 = vld [vmem:[#allocation6 + $0xd4] ss:$8 sps:$4 sm:$0xff]  }
 0x1ed   :  { %2432 = vmatprep.subr.bf16.mxu0 %v4142_v25  ;;  %2604 = vmatprep.subr.bf16.mxu1 %v4145_v26  ;;  %v4227_v25 = vld [vmem:[#allocation6 + $0xd0] ss:$8 sps:$4 sm:$0xff]   ;;  %v4232_v26 = vld [vmem:[#allocation6 + $0xe4] ss:$8 sps:$4 sm:$0xff]  }
 0x1f0   :  { %2433 = vmatpush1.bf16.msra.mxu0 %v4140_v27  ;;  %2605 = vmatpush1.bf16.msra.mxu1 %v4143_v28  ;;  %v4230_v27 = vld [vmem:[#allocation6 + $0xe0] ss:$8 sps:$4 sm:$0xff]   ;;  %v4235_v28 = vld [vmem:[#allocation6 + $0xf4] ss:$8 sps:$4 sm:$0xff]  }
 0x1f1   :  { %2434 = vmatprep.subr.bf16.mxu0 %v4148_v29  ;;  %2606 = vmatprep.subr.bf16.mxu1 %v4151_v30  ;;  %v4233_v29 = vld [vmem:[#allocation6 + $0xf0] ss:$8 sps:$4 sm:$0xff]   ;;  %v4238_v30 = vld [vmem:[#allocation6 + $0x104] ss:$8 sps:$4 sm:$0xff]  }
 0x1f4   :  { %2435 = vmatpush1.bf16.msra.mxu0 %v4146_v31  ;;  %2607 = vmatpush1.bf16.msra.mxu1 %v4149_v12  ;;  %v4284_v31 = vld [vmem:[#allocation7 + $0x40] sm:$0xff]  }
 0x1f5   :  { %2436 = vmatprep.subr.bf16.mxu0 %v4154_v32  ;;  %2608 = vmatprep.subr.bf16.mxu1 %v4157_v33  ;;  %v4285_v12 = vld [vmem:[#allocation7] sm:$0xff]   ;;  %v4286_v32 = vld [vmem:[#allocation7 + $0x48] sm:$0xff]  }
 0x1f6   :  { %v4287_v33 = vld [vmem:[#allocation7 + $0x8] sm:$0xff]  }
 0x1f8   :  { %2437 = vmatpush1.bf16.msra.mxu0 %v4152_v34  ;;  %2609 = vmatpush1.bf16.msra.mxu1 %v4155_v35  ;;  %v4288_v34 = vld [vmem:[#allocation7 + $0x50] sm:$0xff]  }
 0x1f9   :  { %2438 = vmatprep.subr.bf16.mxu0 %v4160_v36  ;;  %2610 = vmatprep.subr.bf16.mxu1 %v4163_v37  ;;  %v4289_v35 = vld [vmem:[#allocation7 + $0x10] sm:$0xff]   ;;  %v4290_v36 = vld [vmem:[#allocation7 + $0x58] sm:$0xff]  }
 0x1fa   :  { %v4291_v37 = vld [vmem:[#allocation7 + $0x18] sm:$0xff]  }
 0x1fc   :  { %2439 = vmatpush1.bf16.msra.mxu0 %v4158_v38  ;;  %2611 = vmatpush1.bf16.msra.mxu1 %v4161_v39  ;;  %v4292_v38 = vld [vmem:[#allocation7 + $0x60] sm:$0xff]  }
 0x1fd   :  { %2440 = vmatprep.subr.bf16.mxu0 %v4166_v40  ;;  %2612 = vmatprep.subr.bf16.mxu1 %v4169_v41  ;;  %v4293_v39 = vld [vmem:[#allocation7 + $0x20] sm:$0xff]  }
 0x1fe   :  { %v985_v40 = vld [vmem:[%s4604_s4] sm:$0xf] }
 0x1ff   :  { %v990_v41 = vrot.slane %v985_v40, %v4524_v11 }
 0x200   :  { %2441 = vmatpush1.bf16.msra.mxu0 %v4164_v42  ;;  %2613 = vmatpush1.bf16.msra.mxu1 %v4167_v43  ;;  %v998_v42 = vrot.slane %v985_v40, %v167_v8  ;;  %v994_v43 = vrot.slane %v985_v40, %v4532_v0 }
 0x201   :  { %2442 = vmatprep.subr.bf16.mxu0 %v4172_v2  ;;  %2614 = vmatprep.subr.bf16.mxu1 %v4175_v45  ;;  %v1002_v2 = vrot.slane %v985_v40, %v171_v14  ;;  %v4271_v40 = vld [vmem:[#allocation6 + $0x1b4] ss:$8 sps:$4 sm:$0xff]  }
 0x204   :  { %2443 = vmatpush1.bf16.msra.mxu0 %v4170_v48  ;;  %2615 = vmatpush1.bf16.msra.mxu1 %v4173_v49 }
 0x205   :  { %2444 = vmatprep.subr.bf16.mxu0 %v4178_v50  ;;  %2616 = vmatprep.subr.bf16.mxu1 %v4181_v51 }
 0x208   :  { %2445 = vmatpush1.bf16.msra.mxu0 %v4176_v52  ;;  %2617 = vmatpush1.bf16.msra.mxu1 %v4179_v53 }
 0x209   :  { %2446 = vmatprep.subr.bf16.mxu0 %v4184_v54  ;;  %2618 = vmatprep.subr.bf16.mxu1 %v4187_v55 }
 0x20c   :  { %2447 = vmatpush1.bf16.msra.mxu0 %v4182_v56  ;;  %2619 = vmatpush1.bf16.msra.mxu1 %v4185_v46 }
 0x20d   :  { %3047 = vmatprep.subr.bf16.mxu0 %v4190_v57  ;;  %3729 = vmatprep.subr.bf16.mxu1 %v4284_v31  ;;  %v4256_v31 = vld [vmem:[#allocation6 + $0x164] ss:$8 sps:$4 sm:$0xff]  }
 0x20f   :  { %2449 = vmatmul.mubr.bf16.vlgmr.msra.gmra.mrb[4].mxu0 %v4560_v44  ;;  %2621 = vmatmul.mubr.bf16.vlgmr.msra.gmra.mrb[12].mxu1 %v4560_v44  ;;  %v4208_v44 = vld [vmem:[#allocation6 + $0x64] ss:$8 sps:$4 sm:$0xff]  }
 0x210   :  { %3048 = vmatpush1.bf16.msra.mxu0 %v4188_v58  ;;  %3730 = vmatpush3.bf16.msra.mxu1 %v4285_v12  ;;  %v4254_v12 = vld [vmem:[#allocation6 + $0x160] ss:$8 sps:$4 sm:$0xff]  }
 0x211   :  { %3049 = vmatprep.subr.bf16.mxu0 %v4193_v59  ;;  %3731 = vmatprep.subr.bf16.mxu1 %v4286_v32  ;;  %v4259_v32 = vld [vmem:[#allocation6 + $0x174] ss:$8 sps:$4 sm:$0xff]  }
 0x214   :  { %3050 = vmatpush1.bf16.msra.mxu0 %v4191_v60  ;;  %3732 = vmatpush3.bf16.msra.mxu1 %v4287_v33  ;;  %v4257_v33 = vld [vmem:[#allocation6 + $0x170] ss:$8 sps:$4 sm:$0xff]  }
 0x215   :  { %3051 = vmatprep.subr.bf16.mxu0 %v4196_v61  ;;  %3733 = vmatprep.subr.bf16.mxu1 %v4288_v34  ;;  %v4262_v34 = vld [vmem:[#allocation6 + $0x184] ss:$8 sps:$4 sm:$0xff]  }
 0x218   :  { %3052 = vmatpush1.bf16.msra.mxu0 %v4194_v3  ;;  %3734 = vmatpush3.bf16.msra.mxu1 %v4289_v35  ;;  %v4260_v35 = vld [vmem:[#allocation6 + $0x180] ss:$8 sps:$4 sm:$0xff]  }
 0x219   :  { %3053 = vmatprep.subr.bf16.mxu0 %v4199_v62  ;;  %3735 = vmatprep.subr.bf16.mxu1 %v4290_v36  ;;  %v4265_v36 = vld [vmem:[#allocation6 + $0x194] ss:$8 sps:$4 sm:$0xff]  }
 0x21c   :  { %3054 = vmatpush1.bf16.msra.mxu0 %v4197_v1  ;;  %3736 = vmatpush3.bf16.msra.mxu1 %v4291_v37  ;;  %v4263_v37 = vld [vmem:[#allocation6 + $0x190] ss:$8 sps:$4 sm:$0xff]  }
 0x21d   :  { %3055 = vmatprep.subr.bf16.mxu0 %v4202_v63  ;;  %3737 = vmatprep.subr.bf16.mxu1 %v4292_v38  ;;  %v4268_v38 = vld [vmem:[#allocation6 + $0x1a4] ss:$8 sps:$4 sm:$0xff]  }
 0x220   :  { %3056 = vmatpush1.bf16.msra.mxu0 %v4200_v4  ;;  %3738 = vmatpush3.bf16.msra.mxu1 %v4293_v39  ;;  %v4266_v39 = vld [vmem:[#allocation6 + $0x1a0] ss:$8 sps:$4 sm:$0xff]  }
 0x221   :  { %3057 = vmatprep.subr.bf16.mxu0 %v4205_v5 }
 0x224   :  { %3058 = vmatpush1.bf16.msra.mxu0 %v4203_v6 }
 0x225   :  { %3059 = vmatprep.subr.bf16.mxu0 %v4208_v44 }
 0x228   :  { %3060 = vmatpush1.bf16.msra.mxu0 %v4206_v7 }
 0x229   :  { %3061 = vmatprep.subr.bf16.mxu0 %v4211_v47 }
 0x22c   :  { %3062 = vmatpush1.bf16.msra.mxu0 %v4209_v9 }
 0x22d   :  { %3063 = vmatprep.subr.bf16.mxu0 %v4214_v13 }
 0x230   :  { %3064 = vmatpush1.bf16.msra.mxu0 %v4212_v15 }
 0x231   :  { %3065 = vmatprep.subr.bf16.mxu0 %v4217_v16 }
 0x234   :  { %3066 = vmatpush1.bf16.msra.mxu0 %v4215_v17 }
 0x235   :  { %3067 = vmatprep.subr.bf16.mxu0 %v4220_v18 }
 0x238   :  { %3068 = vmatpush1.bf16.msra.mxu0 %v4218_v19  ;;  %v4236_v19 = vld [vmem:[#allocation6 + $0x100] ss:$8 sps:$4 sm:$0xff]  }
 0x239   :  { %3069 = vmatprep.subr.bf16.mxu0 %v4223_v20 }
 0x23c   :  { %3070 = vmatpush1.bf16.msra.mxu0 %v4221_v21  ;;  %v4241_v21 = vld [vmem:[#allocation6 + $0x114] ss:$8 sps:$4 sm:$0xff]  }
 0x23d   :  { %3071 = vmatprep.subr.bf16.mxu0 %v4226_v22  ;;  %v4239_v22 = vld [vmem:[#allocation6 + $0x110] ss:$8 sps:$4 sm:$0xff]  }
 0x240   :  { %3072 = vmatpush1.bf16.msra.mxu0 %v4224_v23  ;;  %v4244_v23 = vld [vmem:[#allocation6 + $0x124] ss:$8 sps:$4 sm:$0xff]  }
 0x241   :  { %3073 = vmatprep.subr.bf16.mxu0 %v4229_v24  ;;  %v4242_v24 = vld [vmem:[#allocation6 + $0x120] ss:$8 sps:$4 sm:$0xff]  }
 0x244   :  { %3074 = vmatpush1.bf16.msra.mxu0 %v4227_v25  ;;  %v4247_v25 = vld [vmem:[#allocation6 + $0x134] ss:$8 sps:$4 sm:$0xff]  }
 0x245   :  { %3075 = vmatprep.subr.bf16.mxu0 %v4232_v26  ;;  %v4245_v26 = vld [vmem:[#allocation6 + $0x130] ss:$8 sps:$4 sm:$0xff]  }
 0x248   :  { %3076 = vmatpush1.bf16.msra.mxu0 %v4230_v27  ;;  %v4250_v27 = vld [vmem:[#allocation6 + $0x144] ss:$8 sps:$4 sm:$0xff]  }
 0x249   :  { %3077 = vmatprep.subr.bf16.mxu0 %v4235_v28  ;;  %v4248_v28 = vld [vmem:[#allocation6 + $0x140] ss:$8 sps:$4 sm:$0xff]  }
 0x24c   :  { %3078 = vmatpush1.bf16.msra.mxu0 %v4233_v29  ;;  %v4253_v29 = vld [vmem:[#allocation6 + $0x154] ss:$8 sps:$4 sm:$0xff]  }
 0x24d   :  { %3090 = vmatprep.subr.bf16.mxu0 %v4238_v30  ;;  %v4251_v30 = vld [vmem:[#allocation6 + $0x150] ss:$8 sps:$4 sm:$0xff]  }
 0x2e2   :  { %v2450_v45 = vpop.f32.mrb[4].mxu0  ;;  %v2622_v48 = vpop.f32.mrb[12].mxu1 }
 0x2e3   :  { %v3751_v49 = vadd.f32 %v2450_v45, %v990_v41  ;;  %v3755_v50 = vadd.f32 %v2622_v48, %v998_v42  ;;  %v2452_v51 = vpop.f32.mrb[5].mxu0  ;;  %v2624_v52 = vpop.f32.mrb[13].mxu1  ;;  %v4275_v45 = vld [vmem:[#allocation6 + $0x1d0] ss:$8 sps:$4 sm:$0xff]   ;;  %v4280_v48 = vld [vmem:[#allocation6 + $0x1e4] ss:$8 sps:$4 sm:$0xff]  }
 0x2e4   :  { %v3752_v53 = vadd.f32 %v2452_v51, %v994_v43  ;;  %v3756_v54 = vadd.f32 %v2624_v52, %v1002_v2  ;;  %v2454_v55 = vpop.f32.mrb[6].mxu0  ;;  %v2626_v56 = vpop.f32.mrb[14].mxu1  ;;  %v4281_v51 = vld [vmem:[#allocation6 + $0x1f0] ss:$8 sps:$4 sm:$0xff]   ;;  %v4294_v52 = vld [vmem:[#allocation7 + $0x68] sm:$0xff]  }
 0x2e5   :  { %v2631_v46 = vmul.f32 0.2, %v3751_v49  ;;  %v2633_v57 = vmul.f32 0.2, %v3755_v50  ;;  %v3753_v58 = vadd.f32 %v2454_v55, %v990_v41  ;;  %v3757_v59 = vadd.f32 %v2626_v56, %v998_v42  ;;  %v2456_v8 = vpop.f32.mrb[7].mxu0  ;;  %v2628_v60 = vpop.f32.mrb[15].mxu1  ;;  %3739 = vmatprep.subr.bf16.mxu1 %v4294_v52 }
 0x2e6   :  { %v2632_v61 = vmul.f32 0.2, %v3752_v53  ;;  %v2634_v3 = vmul.f32 0.2, %v3756_v54  ;;  %v3754_v10 = vadd.f32 %v2456_v8, %v994_v43  ;;  %v3758_v14 = vadd.f32 %v2628_v60, %v1002_v2  ;;  %v4269_v41 = vld [vmem:[#allocation6 + $0x1b0] ss:$8 sps:$4 sm:$0xff]  }
 0x2e7   :  { %v2635_v62 = vmul.f32 0.2, %v3753_v58  ;;  %v2637_v1 = vmul.f32 0.2, %v3757_v59  ;;  %v2639_v5 = vmax.f32 %v3751_v49, %v2631_v46  ;;  %v2641_v6 = vmax.f32 %v3755_v50, %v2633_v57  ;;  %v4274_v42 = vld [vmem:[#allocation6 + $0x1c4] ss:$8 sps:$4 sm:$0xff]  }
 0x2e8   :  { %v2636_v63 = vmul.f32 0.2, %v3754_v10  ;;  %v2638_v4 = vmul.f32 0.2, %v3758_v14  ;;  %v2640_v47 = vmax.f32 %v3752_v53, %v2632_v61  ;;  %v2642_v9 = vmax.f32 %v3756_v54, %v2634_v3  ;;  %v4272_v43 = vld [vmem:[#allocation6 + $0x1c0] ss:$8 sps:$4 sm:$0xff]  }
 0x2e9   :  { %v2643_v44 = vmax.f32 %v3753_v58, %v2635_v62  ;;  %v2645_v7 = vmax.f32 %v3757_v59, %v2637_v1  ;;  %v4277_v2 = vld [vmem:[#allocation6 + $0x1d4] ss:$8 sps:$4 sm:$0xff]   ;;  %v4278_v49 = vld [vmem:[#allocation6 + $0x1e0] ss:$8 sps:$4 sm:$0xff]  }
 0x2ea   :  { %v2644_v13 = vmax.f32 %v3754_v10, %v2636_v63  ;;  %v2646_v15 = vmax.f32 %v3758_v14, %v2638_v4  ;;  %v4283_v50 = vld [vmem:[#allocation6 + $0x1f4] ss:$8 sps:$4 sm:$0xff]   ;;  %v4295_v53 = vld [vmem:[#allocation7 + $0x28] sm:$0xff]   ;;  %v2715_v57 = vld [vmem:[%s4606_s6] sm:$0x3] }
 0x2eb   :  { %v2647_v16 = vpack.c.bf16 %v2643_v44, %v2639_v5  ;;  %v4583_v17 = vpack.c.bf16 %v2645_v7, %v2641_v6  ;;  %3740 = vmatpush3.bf16.msra.mxu1 %v4295_v53  ;;  %v4296_v54 = vld [vmem:[#allocation7 + $0x70] sm:$0xff]   ;;  %v4298_v56 = vld [vmem:[#allocation7 + $0x78] sm:$0xff]   ;;  %v2720_v58 = vrot.slane %v2715_v57, %v4524_v11  ;;  %v2724_v59 = vrot.slane %v2715_v57, %v4532_v0 }
 0x2ec   :  { %v2648_v18 = vpack.c.bf16 %v2644_v13, %v2640_v47  ;;  %v2650_v20 = vpack.c.bf16 %v2646_v15, %v2642_v9  ;;  %v4297_v55 = vld [vmem:[#allocation7 + $0x30] sm:$0xff]   ;;  %3741 = vmatprep.subr.bf16.mxu1 %v4296_v54  ;;  %v4299_v46 = vld [vmem:[#allocation7 + $0x38] sm:$0xff]   ;;  %v3712_v15 = vld [vmem:[%s4608_s8] ss:$0 sm:$0xff] }
 0x2ee   :  { %3079 = vmatprep.mubr.bf16.mxu0 %v2648_v18 }
 0x2ef   :  { %3080 = vmatmul.mubr.bf16.vlgmr.msra.gmra.mrb[8].mxu0 %v2647_v16  ;;  %3742 = vmatpush3.bf16.msra.mxu1 %v4297_v55 }
 0x2f0   :  { %3091 = vmatpush1.bf16.msra.mxu0 %v4236_v19  ;;  %3122 = vmatprep.mubr.bf16.mxu0 %v2650_v20 }
 0x2f1   :  { %3092 = vmatprep.subr.bf16.mxu0 %v4241_v21  ;;  %3743 = vmatprep.subr.bf16.mxu1 %v4298_v56 }
 0x2f3   :  { %3744 = vmatpush3.bf16.msra.mxu1 %v4299_v46 }
 0x2f4   :  { %3093 = vmatpush1.bf16.msra.mxu0 %v4239_v22 }
 0x2f5   :  { %3094 = vmatprep.subr.bf16.mxu0 %v4244_v23 }
 0x2f8   :  { %3095 = vmatpush1.bf16.msra.mxu0 %v4242_v24 }
 0x2f9   :  { %3096 = vmatprep.subr.bf16.mxu0 %v4247_v25 }
 0x2fc   :  { %3097 = vmatpush1.bf16.msra.mxu0 %v4245_v26 }
 0x2fd   :  { %3098 = vmatprep.subr.bf16.mxu0 %v4250_v27 }
 0x300   :  { %3099 = vmatpush1.bf16.msra.mxu0 %v4248_v28 }
 0x301   :  { %3100 = vmatprep.subr.bf16.mxu0 %v4253_v29 }
 0x304   :  { %3101 = vmatpush1.bf16.msra.mxu0 %v4251_v30 }
 0x305   :  { %3102 = vmatprep.subr.bf16.mxu0 %v4256_v31 }
 0x308   :  { %3103 = vmatpush1.bf16.msra.mxu0 %v4254_v12 }
 0x309   :  { %3104 = vmatprep.subr.bf16.mxu0 %v4259_v32 }
 0x30c   :  { %3105 = vmatpush1.bf16.msra.mxu0 %v4257_v33 }
 0x30d   :  { %3106 = vmatprep.subr.bf16.mxu0 %v4262_v34 }
 0x310   :  { %3107 = vmatpush1.bf16.msra.mxu0 %v4260_v35 }
 0x311   :  { %3108 = vmatprep.subr.bf16.mxu0 %v4265_v36 }
 0x314   :  { %3109 = vmatpush1.bf16.msra.mxu0 %v4263_v37 }
 0x315   :  { %3110 = vmatprep.subr.bf16.mxu0 %v4268_v38 }
 0x318   :  { %3111 = vmatpush1.bf16.msra.mxu0 %v4266_v39 }
 0x319   :  { %3112 = vmatprep.subr.bf16.mxu0 %v4271_v40 }
 0x31c   :  { %3113 = vmatpush1.bf16.msra.mxu0 %v4269_v41 }
 0x31d   :  { %3114 = vmatprep.subr.bf16.mxu0 %v4274_v42 }
 0x320   :  { %3115 = vmatpush1.bf16.msra.mxu0 %v4272_v43 }
 0x321   :  { %3116 = vmatprep.subr.bf16.mxu0 %v4277_v2 }
 0x324   :  { %3117 = vmatpush1.bf16.msra.mxu0 %v4275_v45 }
 0x325   :  { %3118 = vmatprep.subr.bf16.mxu0 %v4280_v48 }
 0x328   :  { %3119 = vmatpush1.bf16.msra.mxu0 %v4278_v49 }
 0x329   :  { %3120 = vmatprep.subr.bf16.mxu0 %v4283_v50 }
 0x32c   :  { %3121 = vmatpush1.bf16.msra.mxu0 %v4281_v51 }
 0x32f   :  { %3123 = vmatmul.mubr.bf16.vlgmr.msra.gmra.mrb[8].mxu0 %v4583_v17 }
 0x402   :  { %v3124_v8 = vpop.f32.mrb[8].mxu0 }
 0x403   :  { %v3759_v60 = vadd.f32 %v3124_v8, %v2720_v58  ;;  %v3126_v61 = vpop.f32.mrb[9].mxu0 }
 0x404   :  { %v3760_v3 = vadd.f32 %v3126_v61, %v2724_v59  ;;  %v3128_v10 = vpop.f32.mrb[10].mxu0 }
 0x405   :  { %v3133_v14 = vmul.f32 0.2, %v3759_v60  ;;  %v3761_v62 = vadd.f32 %v3128_v10, %v2720_v58  ;;  %v3130_v1 = vpop.f32.mrb[11].mxu0 }
 0x406   :  { %v3134_v63 = vmul.f32 0.2, %v3760_v3  ;;  %v3762_v4 = vadd.f32 %v3130_v1, %v2724_v59 }
 0x407   :  { %v3135_v5 = vmul.f32 0.2, %v3761_v62  ;;  %v3137_v44 = vmax.f32 %v3759_v60, %v3133_v14 }
 0x408   :  { %v3136_v6 = vmul.f32 0.2, %v3762_v4  ;;  %v3138_v47 = vmax.f32 %v3760_v3, %v3134_v63 }
 0x409   :  { %v3139_v7 = vmax.f32 %v3761_v62, %v3135_v5 }
 0x40a   :  { %v3140_v9 = vmax.f32 %v3762_v4, %v3136_v6 }
 0x40b   :  { %v3141_v13 = vpack.c.bf16 %v3139_v7, %v3137_v44 }
 0x40c   :  { %v3142_v11 = vpack.c.bf16 %v3140_v9, %v3138_v47 }
 0x40e   :  { %3310 = vmatprep.mubr.bf16.mxu1 %v3142_v11 }
 0x40f   :  { %3311 = vmatmul.mubr.bf16.vlgmr.msra.gmra.mrb[16].mxu1 %v3141_v13 }
 0x4e2   :  { %v3745_v0 = vpop.f32.mrb[16].mxu1 }
 0x4e3   :  { %v3746_v16 = vpop.f32.mrb[17].mxu1 }
 0x4e4   :  { %v3747_v17 = vadd.f32 %v3746_v16, %v3745_v0  ;;  %v3748_v18 = vpop.f32.mrb[18].mxu1 }
 0x4e5   :  { %v3749_v19 = vpop.f32.mrb[19].mxu1 }
 0x4e6   :  { %v3313_v20 = vadd.f32 %v3747_v17, %v3712_v15  ;;  %v3750_v21 = vadd.f32 %v3749_v19, %v3748_v18 }
 0x4e8   :  { %3319 = vst [vmem:[%s4609_s9] sm:$0xff] %v3313_v20  ;;  %v3316_v22 = vadd.f32 %v3750_v21, %v3712_v15 }
 0x4ea   :  { %3320 = vst [vmem:[%s4609_s9 + $0x8] sm:$0xff] %v3316_v22 }
 0x4eb   :  { %3325 = vsyncpa [#allocation3], 1 }
 0x4ec   :  { %3326 = vsyncpa [#allocation5], 1 }
 0x4ed   :  { %3327 = vsyncpa [#allocation8], 1 }

</bundles_post_ra>
